<compile_context>
chip_gen: v7x
topology: tpu7x:2x2x1
jax: 0.10.0
libtpu: 0.0.40
codegen_flags: <defaults>
</compile_context>

<pallas_src>
import functools
import math

import jax
import jax.numpy as jnp
from jax import lax
from jax.experimental import pallas as pl
from jax.experimental.pallas import tpu as pltpu

# ----------------------------- small BERT config -----------------------------
VOCAB = 30
HIDDEN = 32          # config.hidden_size
LAYERS = 2
HEADS = 4
HEAD_DIM = HIDDEN // HEADS
INTER = 64           # intermediate (FFN) size = 4 * hidden
MAX_POS = 16
TYPE_VOCAB = 2
NUM_CLASSES = 2
CLS_PAD = 128        # lane-dense padded classifier width
LN_EPS = 1e-12       # BERT LayerNorm eps
ATTN_SCALE = 1.0 / math.sqrt(HEAD_DIM)
INV_SQRT2 = 1.0 / math.sqrt(2.0)


def _full_spec(shape):
    """BlockSpec covering the whole array (grid=(1,))."""
    n = len(shape)
    return pl.BlockSpec(shape, lambda i, _n=n: (0,) * _n)


# ------------------------------ in-kernel helpers -----------------------------
def _layernorm(x, gamma, beta):
    mu = jnp.mean(x, axis=-1, keepdims=True)
    var = jnp.mean(jnp.square(x - mu), axis=-1, keepdims=True)
    return (x - mu) * lax.rsqrt(var + LN_EPS) * gamma + beta


def _gelu(x):
    # original BERT gelu: 0.5 * x * (1 + erf(x / sqrt(2)))
    return 0.5 * x * (1.0 + lax.erf(x * jnp.float32(INV_SQRT2)))


# ------------------------------ fused BERT kernel ------------------------------
def _fused_bert_kernel(emb_ref, mask_ref, emb_ln_ref,
                       qkv_w_ref, qkv_b_ref, ao_w_ref, ao_b_ref, attn_ln_ref,
                       i_w_ref, i_b_ref, o_w_ref, o_b_ref, out_ln_ref,
                       cls_w_ref, cls_b_ref, logits_ref, *, batch, seq):
    x = emb_ref[...].astype(jnp.float32)                         # [B*S, H]
    emb_ln = emb_ln_ref[...]
    x = _layernorm(x, emb_ln[0:1, :], emb_ln[1:2, :])
    mask = mask_ref[...]                                         # [B, S] additive

    for l in range(LAYERS):
        # ---- fused QKV projection: one MXU pass ------------------------------
        qkv = jnp.dot(x, qkv_w_ref[l], preferred_element_type=jnp.float32)
        qkv = qkv + qkv_b_ref[l]                                  # [B*S, 3H]

        # ---- per-head attention (head split via static lane slices) ---------
        ctx_heads = []
        for h in range(HEADS):
            lo = h * HEAD_DIM
            qh = qkv[:, lo:lo + HEAD_DIM].reshape(batch, seq, HEAD_DIM)
            kh = qkv[:, HIDDEN + lo:HIDDEN + lo + HEAD_DIM].reshape(batch, seq, HEAD_DIM)
            vh = qkv[:, 2 * HIDDEN + lo:2 * HIDDEN + lo + HEAD_DIM].reshape(batch, seq, HEAD_DIM)

            s = jnp.einsum("bqd,bkd->bqk", qh, kh,
                           preferred_element_type=jnp.float32) * jnp.float32(ATTN_SCALE)
            s = s + mask[:, None, :]
            s = s - jnp.max(s, axis=-1, keepdims=True)            # stable softmax
            p = jnp.exp(s)
            p = p * pl.reciprocal(jnp.sum(p, axis=-1, keepdims=True), approx=True)
            ch = jnp.einsum("bqk,bkd->bqd", p, vh,
                            preferred_element_type=jnp.float32)
            ctx_heads.append(ch.reshape(batch * seq, HEAD_DIM))
        ctx = jnp.concatenate(ctx_heads, axis=-1)                 # [B*S, H]

        # ---- attention output projection + residual + LayerNorm -------------
        attn_out = jnp.dot(ctx, ao_w_ref[l],
                           preferred_element_type=jnp.float32) + ao_b_ref[l]
        ln_p = attn_ln_ref[l]
        x = _layernorm(x + attn_out, ln_p[0:1, :], ln_p[1:2, :])

        # ---- FFN -------------------------------------------------------------
        inter = jnp.dot(x, i_w_ref[l],
                        preferred_element_type=jnp.float32) + i_b_ref[l]
        inter = _gelu(inter)
        ffn = jnp.dot(inter, o_w_ref[l],
                      preferred_element_type=jnp.float32) + o_b_ref[l]
        ln_p = out_ln_ref[l]
        x = _layernorm(x + ffn, ln_p[0:1, :], ln_p[1:2, :])

    # ---- [CLS] token rows (row b*seq) + classifier head (lane-dense, 128) ----
    cls_rows = jnp.concatenate(
        [x[b * seq:b * seq + 1, :] for b in range(batch)], axis=0)    # [B, H]
    logits = jnp.dot(cls_rows, cls_w_ref[...],
                     preferred_element_type=jnp.float32) + cls_b_ref[...]
    logits_ref[...] = logits.astype(logits_ref.dtype)                 # [B, 128]


# ------------------------------- forward wrapper -------------------------------
def bert_for_imdb(packed, input_ids, token_type_ids=None, attention_mask=None):
    """Equivalent of BertForIMDb.forward with attention_show_flg=False,
    output_all_encoded_layers=False. Returns logits [B, 2]."""
    B, S = input_ids.shape
    if token_type_ids is None:
        token_type_ids = jnp.zeros_like(input_ids)
    if attention_mask is None:
        attention_mask = jnp.ones_like(input_ids)
    ext_mask = (1.0 - attention_mask.astype(jnp.float32)) * -10000.0   # [B, S]

    # Embedding gather stays in JAX glue; everything else runs in the kernel.
    pos_ids = jnp.arange(S)
    emb = (packed["word_emb"][input_ids]
           + packed["pos_emb"][pos_ids][None, :, :]
           + packed["type_emb"][token_type_ids])
    emb = emb.reshape(B * S, HIDDEN).astype(jnp.float32)

    operands = (emb, ext_mask, packed["emb_ln"],
                packed["qkv_w"], packed["qkv_b"], packed["ao_w"], packed["ao_b"],
                packed["attn_ln"], packed["i_w"], packed["i_b"],
                packed["o_w"], packed["o_b"], packed["out_ln"],
                packed["cls_w"], packed["cls_b"])

    logits_pad = pl.pallas_call(
        functools.partial(_fused_bert_kernel, batch=B, seq=S),
        grid=(1,),
        out_shape=jax.ShapeDtypeStruct((B, CLS_PAD), jnp.float32),
        in_specs=[_full_spec(op.shape) for op in operands],
        out_specs=_full_spec((B, CLS_PAD)),
        compiler_params=pltpu.CompilerParams(
            dimension_semantics=("arbitrary",)),
    )(*operands)
    # TODO(synk): for larger batches, grid over batch with
    # dimension_semantics=("parallel",) to shard across v7x's 2 TensorCores;
    # at real BERT sizes switch to tiled grids + bf16 matmul operands.
    return logits_pad[:, :NUM_CLASSES]


# ------------------------------- parameter setup -------------------------------
def init_params(key):
    keys = iter(jax.random.split(key, 64))

    def nrm(shape, std=0.02):
        return std * jax.random.normal(next(keys), shape, dtype=jnp.float32)

    params = {
        "word_emb": nrm((VOCAB, HIDDEN)),
        "pos_emb": nrm((MAX_POS, HIDDEN)),
        "type_emb": nrm((TYPE_VOCAB, HIDDEN)),
        "emb_ln_g": jnp.ones((HIDDEN,), jnp.float32),
        "emb_ln_b": jnp.zeros((HIDDEN,), jnp.float32),
        "layers": [],
    }
    for _ in range(LAYERS):
        params["layers"].append({
            "q_w": nrm((HIDDEN, HIDDEN)), "q_b": jnp.zeros((HIDDEN,), jnp.float32),
            "k_w": nrm((HIDDEN, HIDDEN)), "k_b": jnp.zeros((HIDDEN,), jnp.float32),
            "v_w": nrm((HIDDEN, HIDDEN)), "v_b": jnp.zeros((HIDDEN,), jnp.float32),
            "ao_w": nrm((HIDDEN, HIDDEN)), "ao_b": jnp.zeros((HIDDEN,), jnp.float32),
            "attn_ln_g": jnp.ones((HIDDEN,), jnp.float32),
            "attn_ln_b": jnp.zeros((HIDDEN,), jnp.float32),
            "i_w": nrm((HIDDEN, INTER)), "i_b": jnp.zeros((INTER,), jnp.float32),
            "o_w": nrm((INTER, HIDDEN)), "o_b": jnp.zeros((HIDDEN,), jnp.float32),
            "out_ln_g": jnp.ones((HIDDEN,), jnp.float32),
            "out_ln_b": jnp.zeros((HIDDEN,), jnp.float32),
        })
    # classifier head: nn.init.normal_(std=0.02) weight, uniform_ bias
    params["cls_w"] = nrm((HIDDEN, NUM_CLASSES))
    params["cls_b"] = jax.random.uniform(next(keys), (NUM_CLASSES,), dtype=jnp.float32)
    return params


def pack_params(params):
    """One-time packing: stack per-layer weights, fuse QKV, pack LN params,
    pad classifier to a lane-dense width of 128."""
    layers = params["layers"]

    def stack(k):
        return jnp.stack([lp[k] for lp in layers])

    def stack_bias(k):
        return jnp.stack([lp[k].reshape(1, -1) for lp in layers])

    return {
        "word_emb": params["word_emb"],
        "pos_emb": params["pos_emb"],
        "type_emb": params["type_emb"],
        "emb_ln": jnp.stack([params["emb_ln_g"], params["emb_ln_b"]]),       # [2, H]
        "qkv_w": jnp.stack([jnp.concatenate([lp["q_w"], lp["k_w"], lp["v_w"]], axis=1)
                            for lp in layers]),                              # [L, H, 3H]
        "qkv_b": jnp.stack([jnp.concatenate([lp["q_b"], lp["k_b"], lp["v_b"]]).reshape(1, -1)
                            for lp in layers]),                              # [L, 1, 3H]
        "ao_w": stack("ao_w"), "ao_b": stack_bias("ao_b"),
        "attn_ln": jnp.stack([jnp.stack([lp["attn_ln_g"], lp["attn_ln_b"]])
                              for lp in layers]),                            # [L, 2, H]
        "i_w": stack("i_w"), "i_b": stack_bias("i_b"),
        "o_w": stack("o_w"), "o_b": stack_bias("o_b"),
        "out_ln": jnp.stack([jnp.stack([lp["out_ln_g"], lp["out_ln_b"]])
                             for lp in layers]),                             # [L, 2, H]
        "cls_w": jnp.zeros((HIDDEN, CLS_PAD), jnp.float32).at[:, :NUM_CLASSES].set(params["cls_w"]),
        "cls_b": jnp.zeros((1, CLS_PAD), jnp.float32).at[0, :NUM_CLASSES].set(params["cls_b"]),
    }


# ------------------------------ pure-JAX reference ------------------------------
def bert_ref(params, input_ids, token_type_ids=None, attention_mask=None):
    B, S = input_ids.shape
    if token_type_ids is None:
        token_type_ids = jnp.zeros_like(input_ids)
    if attention_mask is None:
        attention_mask = jnp.ones_like(input_ids)
    ext = (1.0 - attention_mask.astype(jnp.float32)) * -10000.0

    def ln(x, g, b):
        mu = x.mean(-1, keepdims=True)
        var = ((x - mu) ** 2).mean(-1, keepdims=True)
        return (x - mu) / jnp.sqrt(var + LN_EPS) * g + b

    emb = (params["word_emb"][input_ids]
           + params["pos_emb"][jnp.arange(S)][None]
           + params["type_emb"][token_type_ids])
    x = ln(emb, params["emb_ln_g"], params["emb_ln_b"])
    for lp in params["layers"]:
        q = x @ lp["q_w"] + lp["q_b"]
        k = x @ lp["k_w"] + lp["k_b"]
        v = x @ lp["v_w"] + lp["v_b"]

        def split(t):
            return t.reshape(B, S, HEADS, HEAD_DIM).transpose(0, 2, 1, 3)

        s = jnp.einsum("bhqd,bhkd->bhqk", split(q), split(k)) * ATTN_SCALE
        s = s + ext[:, None, None, :]
        p = jax.nn.softmax(s, axis=-1)
        ctx = jnp.einsum("bhqk,bhkd->bhqd", p, split(v)).transpose(0, 2, 1, 3).reshape(B, S, HIDDEN)
        attn_out = ctx @ lp["ao_w"] + lp["ao_b"]
        x = ln(x + attn_out, lp["attn_ln_g"], lp["attn_ln_b"])
        inter = x @ lp["i_w"] + lp["i_b"]
        inter = 0.5 * inter * (1.0 + lax.erf(inter * INV_SQRT2))
        ffn = inter @ lp["o_w"] + lp["o_b"]
        x = ln(x + ffn, lp["out_ln_g"], lp["out_ln_b"])
    return x[:, 0, :] @ params["cls_w"] + params["cls_b"]


# TODO(synk): attention_show_flg=True branch (returning attention_probs) is not
# wired through; only the default classification path is implemented.

if __name__ == "__main__":
    key = jax.random.PRNGKey(0)
    pkey, ikey = jax.random.split(key)
    params = init_params(pkey)
    packed = pack_params(params)

    B, S = 2, 8
    input_ids = jax.random.randint(ikey, (B, S), 0, VOCAB, dtype=jnp.int32)
    attention_mask = jnp.ones((B, S), dtype=jnp.int32)

    fwd = jax.jit(bert_for_imdb)
    logits = fwd(packed, input_ids, attention_mask=attention_mask)
    jax.block_until_ready(logits)
    assert logits.shape == (B, NUM_CLASSES) and logits.dtype == jnp.float32

    ref = bert_ref(params, input_ids, attention_mask=attention_mask)
    err = float(jnp.max(jnp.abs(logits - ref)))
    assert err < 5e-3, f"mismatch vs reference: max abs err {err}"
    print("KERNEL_OK")
</pallas_src>

<mosaic_0001>
module attributes {stable_mosaic.version = 11 : i64} {
  func.func @_fused_bert_kernel(%arg0: i32, %arg1: memref<16x32xf32, #tpu.memory_space<vmem>>, %arg2: memref<2x8xf32, #tpu.memory_space<vmem>>, %arg3: memref<2x32xf32, #tpu.memory_space<vmem>>, %arg4: memref<2x32x96xf32, #tpu.memory_space<vmem>>, %arg5: memref<2x1x96xf32, #tpu.memory_space<vmem>>, %arg6: memref<2x32x32xf32, #tpu.memory_space<vmem>>, %arg7: memref<2x1x32xf32, #tpu.memory_space<vmem>>, %arg8: memref<2x2x32xf32, #tpu.memory_space<vmem>>, %arg9: memref<2x32x64xf32, #tpu.memory_space<vmem>>, %arg10: memref<2x1x64xf32, #tpu.memory_space<vmem>>, %arg11: memref<2x64x32xf32, #tpu.memory_space<vmem>>, %arg12: memref<2x1x32xf32, #tpu.memory_space<vmem>>, %arg13: memref<2x2x32xf32, #tpu.memory_space<vmem>>, %arg14: memref<32x128xf32, #tpu.memory_space<vmem>>, %arg15: memref<1x128xf32, #tpu.memory_space<vmem>>, %arg16: memref<2x128xf32, #tpu.memory_space<vmem>>) attributes {dimension_semantics = [#tpu.dimension_semantics<arbitrary>], iteration_bounds = array<i64: 1>, scalar_prefetch = 0 : i64, scratch_operands = 0 : i64, tpu.core_type = #tpu.core_type<tc>, window_params = [{pipeline_mode = #tpu.pipeline_mode<synchronous>, transform_indices = @transform_0, window_bounds = array<i64: 16, 32>}, {pipeline_mode = #tpu.pipeline_mode<synchronous>, transform_indices = @transform_1, window_bounds = array<i64: 2, 8>}, {pipeline_mode = #tpu.pipeline_mode<synchronous>, transform_indices = @transform_2, window_bounds = array<i64: 2, 32>}, {pipeline_mode = #tpu.pipeline_mode<synchronous>, transform_indices = @transform_3, window_bounds = array<i64: 2, 32, 96>}, {pipeline_mode = #tpu.pipeline_mode<synchronous>, transform_indices = @transform_4, window_bounds = array<i64: 2, 1, 96>}, {pipeline_mode = #tpu.pipeline_mode<synchronous>, transform_indices = @transform_5, window_bounds = array<i64: 2, 32, 32>}, {pipeline_mode = #tpu.pipeline_mode<synchronous>, transform_indices = @transform_6, window_bounds = array<i64: 2, 1, 32>}, {pipeline_mode = #tpu.pipeline_mode<synchronous>, transform_indices = @transform_7, window_bounds = array<i64: 2, 2, 32>}, {pipeline_mode = #tpu.pipeline_mode<synchronous>, transform_indices = @transform_8, window_bounds = array<i64: 2, 32, 64>}, {pipeline_mode = #tpu.pipeline_mode<synchronous>, transform_indices = @transform_9, window_bounds = array<i64: 2, 1, 64>}, {pipeline_mode = #tpu.pipeline_mode<synchronous>, transform_indices = @transform_10, window_bounds = array<i64: 2, 64, 32>}, {pipeline_mode = #tpu.pipeline_mode<synchronous>, transform_indices = @transform_11, window_bounds = array<i64: 2, 1, 32>}, {pipeline_mode = #tpu.pipeline_mode<synchronous>, transform_indices = @transform_12, window_bounds = array<i64: 2, 2, 32>}, {pipeline_mode = #tpu.pipeline_mode<synchronous>, transform_indices = @transform_13, window_bounds = array<i64: 32, 128>}, {pipeline_mode = #tpu.pipeline_mode<synchronous>, transform_indices = @transform_14, window_bounds = array<i64: 1, 128>}, {pipeline_mode = #tpu.pipeline_mode<synchronous>, transform_indices = @transform_15, window_bounds = array<i64: 2, 128>}]} {
    %c0 = arith.constant 0 : index
    %c0_0 = arith.constant 0 : index
    %0 = vector.load %arg1[%c0, %c0_0] : memref<16x32xf32, #tpu.memory_space<vmem>>, vector<16x32xf32>
    %c0_1 = arith.constant 0 : index
    %c0_2 = arith.constant 0 : index
    %1 = vector.load %arg3[%c0_1, %c0_2] : memref<2x32xf32, #tpu.memory_space<vmem>>, vector<2x32xf32>
    %2 = vector.extract_strided_slice %1 {offsets = [0, 0], sizes = [1, 32], strides = [1, 1]} : vector<2x32xf32> to vector<1x32xf32>
    %3 = vector.extract_strided_slice %1 {offsets = [1, 0], sizes = [1, 32], strides = [1, 1]} : vector<2x32xf32> to vector<1x32xf32>
    %cst = arith.constant dense<0.000000e+00> : vector<16xf32>
    %4 = vector.multi_reduction <add>, %0, %cst [1] : vector<16x32xf32> to vector<16xf32>
    %5 = vector.shape_cast %4 : vector<16xf32> to vector<16x1xf32>
    %cst_3 = arith.constant 3.200000e+01 : f32
    %6 = vector.broadcast %cst_3 : f32 to vector<16x1xf32>
    %7 = arith.divf %5, %6 : vector<16x1xf32>
    %8 = vector.broadcast %7 : vector<16x1xf32> to vector<16x32xf32>
    %9 = arith.subf %0, %8 : vector<16x32xf32>
    %10 = arith.mulf %9, %9 : vector<16x32xf32>
    %cst_4 = arith.constant dense<0.000000e+00> : vector<16xf32>
    %11 = vector.multi_reduction <add>, %10, %cst_4 [1] : vector<16x32xf32> to vector<16xf32>
    %12 = vector.shape_cast %11 : vector<16xf32> to vector<16x1xf32>
    %cst_5 = arith.constant 3.200000e+01 : f32
    %13 = vector.broadcast %cst_5 : f32 to vector<16x1xf32>
    %14 = arith.divf %12, %13 : vector<16x1xf32>
    %15 = vector.broadcast %7 : vector<16x1xf32> to vector<16x32xf32>
    %16 = arith.subf %0, %15 : vector<16x32xf32>
    %cst_6 = arith.constant 9.99999996E-13 : f32
    %17 = vector.broadcast %cst_6 : f32 to vector<16x1xf32>
    %18 = arith.addf %14, %17 : vector<16x1xf32>
    %19 = math.rsqrt %18 : vector<16x1xf32>
    %20 = vector.broadcast %19 : vector<16x1xf32> to vector<16x32xf32>
    %21 = arith.mulf %16, %20 : vector<16x32xf32>
    %22 = vector.broadcast %2 : vector<1x32xf32> to vector<16x32xf32>
    %23 = arith.mulf %21, %22 : vector<16x32xf32>
    %24 = vector.broadcast %3 : vector<1x32xf32> to vector<16x32xf32>
    %25 = arith.addf %23, %24 : vector<16x32xf32>
    %c0_7 = arith.constant 0 : index
    %c0_8 = arith.constant 0 : index
    %26 = vector.load %arg2[%c0_7, %c0_8] : memref<2x8xf32, #tpu.memory_space<vmem>>, vector<2x8xf32>
    %c0_9 = arith.constant 0 : index
    %c0_10 = arith.constant 0 : index
    %c0_11 = arith.constant 0 : index
    %27 = vector.load %arg4[%c0_9, %c0_10, %c0_11] : memref<2x32x96xf32, #tpu.memory_space<vmem>>, vector<1x32x96xf32>
    %28 = vector.shape_cast %27 : vector<1x32x96xf32> to vector<32x96xf32>
    %cst_12 = arith.constant dense<0.000000e+00> : vector<16x96xf32>
    %29 = tpu.matmul %25, %28, %cst_12 {dimension_numbers = #tpu.dot_dimension_numbers<[1], [0], [0], [1], [0, 0, 1, 1], [], []>} : vector<16x32xf32>, vector<32x96xf32>, vector<16x96xf32> -> vector<16x96xf32>
    %c0_13 = arith.constant 0 : index
    %c0_14 = arith.constant 0 : index
    %c0_15 = arith.constant 0 : index
    %30 = vector.load %arg5[%c0_13, %c0_14, %c0_15] : memref<2x1x96xf32, #tpu.memory_space<vmem>>, vector<1x1x96xf32>
    %31 = vector.shape_cast %30 : vector<1x1x96xf32> to vector<1x96xf32>
    %32 = vector.broadcast %31 : vector<1x96xf32> to vector<16x96xf32>
    %33 = arith.addf %29, %32 : vector<16x96xf32>
    %34 = vector.extract_strided_slice %33 {offsets = [0, 0], sizes = [16, 8], strides = [1, 1]} : vector<16x96xf32> to vector<16x8xf32>
    %35 = vector.shape_cast %34 : vector<16x8xf32> to vector<2x8x8xf32>
    %36 = vector.extract_strided_slice %33 {offsets = [0, 32], sizes = [16, 8], strides = [1, 1]} : vector<16x96xf32> to vector<16x8xf32>
    %37 = vector.shape_cast %36 : vector<16x8xf32> to vector<2x8x8xf32>
    %38 = vector.extract_strided_slice %33 {offsets = [0, 64], sizes = [16, 8], strides = [1, 1]} : vector<16x96xf32> to vector<16x8xf32>
    %39 = vector.shape_cast %38 : vector<16x8xf32> to vector<2x8x8xf32>
    "tpu.trace_start"() <{level = 10 : i32, message = "bqd,bkd->bqk"}> : () -> ()
    %cst_16 = arith.constant dense<0.000000e+00> : vector<2x8x8xf32>
    %40 = tpu.matmul %35, %37, %cst_16 {dimension_numbers = #tpu.dot_dimension_numbers<[2], [2], [1], [1], [0, 0, 0, 1, 1, 1], [0], [0]>} : vector<2x8x8xf32>, vector<2x8x8xf32>, vector<2x8x8xf32> -> vector<2x8x8xf32>
    "tpu.trace_stop"() : () -> ()
    %cst_17 = arith.constant 0.353553385 : f32
    %41 = vector.broadcast %cst_17 : f32 to vector<2x8x8xf32>
    %42 = arith.mulf %40, %41 : vector<2x8x8xf32>
    %43 = vector.shape_cast %26 : vector<2x8xf32> to vector<2x1x8xf32>
    %44 = vector.broadcast %43 : vector<2x1x8xf32> to vector<2x8x8xf32>
    %45 = arith.addf %42, %44 : vector<2x8x8xf32>
    %cst_18 = arith.constant dense<0xFF800000> : vector<2x8xf32>
    %46 = vector.multi_reduction <maximumf>, %45, %cst_18 [2] : vector<2x8x8xf32> to vector<2x8xf32>
    %47 = vector.shape_cast %46 : vector<2x8xf32> to vector<2x8x1xf32>
    %48 = vector.broadcast %47 : vector<2x8x1xf32> to vector<2x8x8xf32>
    %49 = arith.subf %45, %48 : vector<2x8x8xf32>
    %50 = math.exp %49 : vector<2x8x8xf32>
    %cst_19 = arith.constant dense<0.000000e+00> : vector<2x8xf32>
    %51 = vector.multi_reduction <add>, %50, %cst_19 [2] : vector<2x8x8xf32> to vector<2x8xf32>
    %52 = vector.shape_cast %51 : vector<2x8xf32> to vector<2x8x1xf32>
    %53 = tpu.reciprocal %52 {approx = true} : vector<2x8x1xf32> -> vector<2x8x1xf32>
    %54 = vector.broadcast %53 : vector<2x8x1xf32> to vector<2x8x8xf32>
    %55 = arith.mulf %50, %54 : vector<2x8x8xf32>
    "tpu.trace_start"() <{level = 10 : i32, message = "bqk,bkd->bqd"}> : () -> ()
    %cst_20 = arith.constant dense<0.000000e+00> : vector<2x8x8xf32>
    %56 = tpu.matmul %55, %39, %cst_20 {dimension_numbers = #tpu.dot_dimension_numbers<[2], [1], [1], [2], [0, 0, 0, 1, 1, 2], [0], [0]>} : vector<2x8x8xf32>, vector<2x8x8xf32>, vector<2x8x8xf32> -> vector<2x8x8xf32>
    "tpu.trace_stop"() : () -> ()
    %57 = vector.shape_cast %56 : vector<2x8x8xf32> to vector<16x8xf32>
    %58 = vector.extract_strided_slice %33 {offsets = [0, 8], sizes = [16, 8], strides = [1, 1]} : vector<16x96xf32> to vector<16x8xf32>
    %59 = vector.shape_cast %58 : vector<16x8xf32> to vector<2x8x8xf32>
    %60 = vector.extract_strided_slice %33 {offsets = [0, 40], sizes = [16, 8], strides = [1, 1]} : vector<16x96xf32> to vector<16x8xf32>
    %61 = vector.shape_cast %60 : vector<16x8xf32> to vector<2x8x8xf32>
    %62 = vector.extract_strided_slice %33 {offsets = [0, 72], sizes = [16, 8], strides = [1, 1]} : vector<16x96xf32> to vector<16x8xf32>
    %63 = vector.shape_cast %62 : vector<16x8xf32> to vector<2x8x8xf32>
    "tpu.trace_start"() <{level = 10 : i32, message = "bqd,bkd->bqk"}> : () -> ()
    %cst_21 = arith.constant dense<0.000000e+00> : vector<2x8x8xf32>
    %64 = tpu.matmul %59, %61, %cst_21 {dimension_numbers = #tpu.dot_dimension_numbers<[2], [2], [1], [1], [0, 0, 0, 1, 1, 1], [0], [0]>} : vector<2x8x8xf32>, vector<2x8x8xf32>, vector<2x8x8xf32> -> vector<2x8x8xf32>
    "tpu.trace_stop"() : () -> ()
    %cst_22 = arith.constant 0.353553385 : f32
    %65 = vector.broadcast %cst_22 : f32 to vector<2x8x8xf32>
    %66 = arith.mulf %64, %65 : vector<2x8x8xf32>
    %67 = vector.shape_cast %26 : vector<2x8xf32> to vector<2x1x8xf32>
    %68 = vector.broadcast %67 : vector<2x1x8xf32> to vector<2x8x8xf32>
    %69 = arith.addf %66, %68 : vector<2x8x8xf32>
    %cst_23 = arith.constant dense<0xFF800000> : vector<2x8xf32>
    %70 = vector.multi_reduction <maximumf>, %69, %cst_23 [2] : vector<2x8x8xf32> to vector<2x8xf32>
    %71 = vector.shape_cast %70 : vector<2x8xf32> to vector<2x8x1xf32>
    %72 = vector.broadcast %71 : vector<2x8x1xf32> to vector<2x8x8xf32>
    %73 = arith.subf %69, %72 : vector<2x8x8xf32>
    %74 = math.exp %73 : vector<2x8x8xf32>
    %cst_24 = arith.constant dense<0.000000e+00> : vector<2x8xf32>
    %75 = vector.multi_reduction <add>, %74, %cst_24 [2] : vector<2x8x8xf32> to vector<2x8xf32>
    %76 = vector.shape_cast %75 : vector<2x8xf32> to vector<2x8x1xf32>
    %77 = tpu.reciprocal %76 {approx = true} : vector<2x8x1xf32> -> vector<2x8x1xf32>
    %78 = vector.broadcast %77 : vector<2x8x1xf32> to vector<2x8x8xf32>
    %79 = arith.mulf %74, %78 : vector<2x8x8xf32>
    "tpu.trace_start"() <{level = 10 : i32, message = "bqk,bkd->bqd"}> : () -> ()
    %cst_25 = arith.constant dense<0.000000e+00> : vector<2x8x8xf32>
    %80 = tpu.matmul %79, %63, %cst_25 {dimension_numbers = #tpu.dot_dimension_numbers<[2], [1], [1], [2], [0, 0, 0, 1, 1, 2], [0], [0]>} : vector<2x8x8xf32>, vector<2x8x8xf32>, vector<2x8x8xf32> -> vector<2x8x8xf32>
    "tpu.trace_stop"() : () -> ()
    %81 = vector.shape_cast %80 : vector<2x8x8xf32> to vector<16x8xf32>
    %82 = vector.extract_strided_slice %33 {offsets = [0, 16], sizes = [16, 8], strides = [1, 1]} : vector<16x96xf32> to vector<16x8xf32>
    %83 = vector.shape_cast %82 : vector<16x8xf32> to vector<2x8x8xf32>
    %84 = vector.extract_strided_slice %33 {offsets = [0, 48], sizes = [16, 8], strides = [1, 1]} : vector<16x96xf32> to vector<16x8xf32>
    %85 = vector.shape_cast %84 : vector<16x8xf32> to vector<2x8x8xf32>
    %86 = vector.extract_strided_slice %33 {offsets = [0, 80], sizes = [16, 8], strides = [1, 1]} : vector<16x96xf32> to vector<16x8xf32>
    %87 = vector.shape_cast %86 : vector<16x8xf32> to vector<2x8x8xf32>
    "tpu.trace_start"() <{level = 10 : i32, message = "bqd,bkd->bqk"}> : () -> ()
    %cst_26 = arith.constant dense<0.000000e+00> : vector<2x8x8xf32>
    %88 = tpu.matmul %83, %85, %cst_26 {dimension_numbers = #tpu.dot_dimension_numbers<[2], [2], [1], [1], [0, 0, 0, 1, 1, 1], [0], [0]>} : vector<2x8x8xf32>, vector<2x8x8xf32>, vector<2x8x8xf32> -> vector<2x8x8xf32>
    "tpu.trace_stop"() : () -> ()
    %cst_27 = arith.constant 0.353553385 : f32
    %89 = vector.broadcast %cst_27 : f32 to vector<2x8x8xf32>
    %90 = arith.mulf %88, %89 : vector<2x8x8xf32>
    %91 = vector.shape_cast %26 : vector<2x8xf32> to vector<2x1x8xf32>
    %92 = vector.broadcast %91 : vector<2x1x8xf32> to vector<2x8x8xf32>
    %93 = arith.addf %90, %92 : vector<2x8x8xf32>
    %cst_28 = arith.constant dense<0xFF800000> : vector<2x8xf32>
    %94 = vector.multi_reduction <maximumf>, %93, %cst_28 [2] : vector<2x8x8xf32> to vector<2x8xf32>
    %95 = vector.shape_cast %94 : vector<2x8xf32> to vector<2x8x1xf32>
    %96 = vector.broadcast %95 : vector<2x8x1xf32> to vector<2x8x8xf32>
    %97 = arith.subf %93, %96 : vector<2x8x8xf32>
    %98 = math.exp %97 : vector<2x8x8xf32>
    %cst_29 = arith.constant dense<0.000000e+00> : vector<2x8xf32>
    %99 = vector.multi_reduction <add>, %98, %cst_29 [2] : vector<2x8x8xf32> to vector<2x8xf32>
    %100 = vector.shape_cast %99 : vector<2x8xf32> to vector<2x8x1xf32>
    %101 = tpu.reciprocal %100 {approx = true} : vector<2x8x1xf32> -> vector<2x8x1xf32>
    %102 = vector.broadcast %101 : vector<2x8x1xf32> to vector<2x8x8xf32>
    %103 = arith.mulf %98, %102 : vector<2x8x8xf32>
    "tpu.trace_start"() <{level = 10 : i32, message = "bqk,bkd->bqd"}> : () -> ()
    %cst_30 = arith.constant dense<0.000000e+00> : vector<2x8x8xf32>
    %104 = tpu.matmul %103, %87, %cst_30 {dimension_numbers = #tpu.dot_dimension_numbers<[2], [1], [1], [2], [0, 0, 0, 1, 1, 2], [0], [0]>} : vector<2x8x8xf32>, vector<2x8x8xf32>, vector<2x8x8xf32> -> vector<2x8x8xf32>
    "tpu.trace_stop"() : () -> ()
    %105 = vector.shape_cast %104 : vector<2x8x8xf32> to vector<16x8xf32>
    %106 = vector.extract_strided_slice %33 {offsets = [0, 24], sizes = [16, 8], strides = [1, 1]} : vector<16x96xf32> to vector<16x8xf32>
    %107 = vector.shape_cast %106 : vector<16x8xf32> to vector<2x8x8xf32>
    %108 = vector.extract_strided_slice %33 {offsets = [0, 56], sizes = [16, 8], strides = [1, 1]} : vector<16x96xf32> to vector<16x8xf32>
    %109 = vector.shape_cast %108 : vector<16x8xf32> to vector<2x8x8xf32>
    %110 = vector.extract_strided_slice %33 {offsets = [0, 88], sizes = [16, 8], strides = [1, 1]} : vector<16x96xf32> to vector<16x8xf32>
    %111 = vector.shape_cast %110 : vector<16x8xf32> to vector<2x8x8xf32>
    "tpu.trace_start"() <{level = 10 : i32, message = "bqd,bkd->bqk"}> : () -> ()
    %cst_31 = arith.constant dense<0.000000e+00> : vector<2x8x8xf32>
    %112 = tpu.matmul %107, %109, %cst_31 {dimension_numbers = #tpu.dot_dimension_numbers<[2], [2], [1], [1], [0, 0, 0, 1, 1, 1], [0], [0]>} : vector<2x8x8xf32>, vector<2x8x8xf32>, vector<2x8x8xf32> -> vector<2x8x8xf32>
    "tpu.trace_stop"() : () -> ()
    %cst_32 = arith.constant 0.353553385 : f32
    %113 = vector.broadcast %cst_32 : f32 to vector<2x8x8xf32>
    %114 = arith.mulf %112, %113 : vector<2x8x8xf32>
    %115 = vector.shape_cast %26 : vector<2x8xf32> to vector<2x1x8xf32>
    %116 = vector.broadcast %115 : vector<2x1x8xf32> to vector<2x8x8xf32>
    %117 = arith.addf %114, %116 : vector<2x8x8xf32>
    %cst_33 = arith.constant dense<0xFF800000> : vector<2x8xf32>
    %118 = vector.multi_reduction <maximumf>, %117, %cst_33 [2] : vector<2x8x8xf32> to vector<2x8xf32>
    %119 = vector.shape_cast %118 : vector<2x8xf32> to vector<2x8x1xf32>
    %120 = vector.broadcast %119 : vector<2x8x1xf32> to vector<2x8x8xf32>
    %121 = arith.subf %117, %120 : vector<2x8x8xf32>
    %122 = math.exp %121 : vector<2x8x8xf32>
    %cst_34 = arith.constant dense<0.000000e+00> : vector<2x8xf32>
    %123 = vector.multi_reduction <add>, %122, %cst_34 [2] : vector<2x8x8xf32> to vector<2x8xf32>
    %124 = vector.shape_cast %123 : vector<2x8xf32> to vector<2x8x1xf32>
    %125 = tpu.reciprocal %124 {approx = true} : vector<2x8x1xf32> -> vector<2x8x1xf32>
    %126 = vector.broadcast %125 : vector<2x8x1xf32> to vector<2x8x8xf32>
    %127 = arith.mulf %122, %126 : vector<2x8x8xf32>
    "tpu.trace_start"() <{level = 10 : i32, message = "bqk,bkd->bqd"}> : () -> ()
    %cst_35 = arith.constant dense<0.000000e+00> : vector<2x8x8xf32>
    %128 = tpu.matmul %127, %111, %cst_35 {dimension_numbers = #tpu.dot_dimension_numbers<[2], [1], [1], [2], [0, 0, 0, 1, 1, 2], [0], [0]>} : vector<2x8x8xf32>, vector<2x8x8xf32>, vector<2x8x8xf32> -> vector<2x8x8xf32>
    "tpu.trace_stop"() : () -> ()
    %129 = vector.shape_cast %128 : vector<2x8x8xf32> to vector<16x8xf32>
    %130 = tpu.concatenate %57, %81, %105, %129 in 1 : vector<16x8xf32>, vector<16x8xf32>, vector<16x8xf32>, vector<16x8xf32> -> vector<16x32xf32>
    %c0_36 = arith.constant 0 : index
    %c0_37 = arith.constant 0 : index
    %c0_38 = arith.constant 0 : index
    %131 = vector.load %arg6[%c0_36, %c0_37, %c0_38] : memref<2x32x32xf32, #tpu.memory_space<vmem>>, vector<1x32x32xf32>
    %132 = vector.shape_cast %131 : vector<1x32x32xf32> to vector<32x32xf32>
    %cst_39 = arith.constant dense<0.000000e+00> : vector<16x32xf32>
    %133 = tpu.matmul %130, %132, %cst_39 {dimension_numbers = #tpu.dot_dimension_numbers<[1], [0], [0], [1], [0, 0, 1, 1], [], []>} : vector<16x32xf32>, vector<32x32xf32>, vector<16x32xf32> -> vector<16x32xf32>
    %c0_40 = arith.constant 0 : index
    %c0_41 = arith.constant 0 : index
    %c0_42 = arith.constant 0 : index
    %134 = vector.load %arg7[%c0_40, %c0_41, %c0_42] : memref<2x1x32xf32, #tpu.memory_space<vmem>>, vector<1x1x32xf32>
    %135 = vector.shape_cast %134 : vector<1x1x32xf32> to vector<1x32xf32>
    %136 = vector.broadcast %135 : vector<1x32xf32> to vector<16x32xf32>
    %137 = arith.addf %133, %136 : vector<16x32xf32>
    %c0_43 = arith.constant 0 : index
    %c0_44 = arith.constant 0 : index
    %c0_45 = arith.constant 0 : index
    %138 = vector.load %arg8[%c0_43, %c0_44, %c0_45] : memref<2x2x32xf32, #tpu.memory_space<vmem>>, vector<1x2x32xf32>
    %139 = vector.shape_cast %138 : vector<1x2x32xf32> to vector<2x32xf32>
    %140 = arith.addf %25, %137 : vector<16x32xf32>
    %141 = vector.extract_strided_slice %139 {offsets = [0, 0], sizes = [1, 32], strides = [1, 1]} : vector<2x32xf32> to vector<1x32xf32>
    %142 = vector.extract_strided_slice %139 {offsets = [1, 0], sizes = [1, 32], strides = [1, 1]} : vector<2x32xf32> to vector<1x32xf32>
    %cst_46 = arith.constant dense<0.000000e+00> : vector<16xf32>
    %143 = vector.multi_reduction <add>, %140, %cst_46 [1] : vector<16x32xf32> to vector<16xf32>
    %144 = vector.shape_cast %143 : vector<16xf32> to vector<16x1xf32>
    %cst_47 = arith.constant 3.200000e+01 : f32
    %145 = vector.broadcast %cst_47 : f32 to vector<16x1xf32>
    %146 = arith.divf %144, %145 : vector<16x1xf32>
    %147 = vector.broadcast %146 : vector<16x1xf32> to vector<16x32xf32>
    %148 = arith.subf %140, %147 : vector<16x32xf32>
    %149 = arith.mulf %148, %148 : vector<16x32xf32>
    %cst_48 = arith.constant dense<0.000000e+00> : vector<16xf32>
    %150 = vector.multi_reduction <add>, %149, %cst_48 [1] : vector<16x32xf32> to vector<16xf32>
    %151 = vector.shape_cast %150 : vector<16xf32> to vector<16x1xf32>
    %cst_49 = arith.constant 3.200000e+01 : f32
    %152 = vector.broadcast %cst_49 : f32 to vector<16x1xf32>
    %153 = arith.divf %151, %152 : vector<16x1xf32>
    %154 = vector.broadcast %146 : vector<16x1xf32> to vector<16x32xf32>
    %155 = arith.subf %140, %154 : vector<16x32xf32>
    %cst_50 = arith.constant 9.99999996E-13 : f32
    %156 = vector.broadcast %cst_50 : f32 to vector<16x1xf32>
    %157 = arith.addf %153, %156 : vector<16x1xf32>
    %158 = math.rsqrt %157 : vector<16x1xf32>
    %159 = vector.broadcast %158 : vector<16x1xf32> to vector<16x32xf32>
    %160 = arith.mulf %155, %159 : vector<16x32xf32>
    %161 = vector.broadcast %141 : vector<1x32xf32> to vector<16x32xf32>
    %162 = arith.mulf %160, %161 : vector<16x32xf32>
    %163 = vector.broadcast %142 : vector<1x32xf32> to vector<16x32xf32>
    %164 = arith.addf %162, %163 : vector<16x32xf32>
    %c0_51 = arith.constant 0 : index
    %c0_52 = arith.constant 0 : index
    %c0_53 = arith.constant 0 : index
    %165 = vector.load %arg9[%c0_51, %c0_52, %c0_53] : memref<2x32x64xf32, #tpu.memory_space<vmem>>, vector<1x32x64xf32>
    %166 = vector.shape_cast %165 : vector<1x32x64xf32> to vector<32x64xf32>
    %cst_54 = arith.constant dense<0.000000e+00> : vector<16x64xf32>
    %167 = tpu.matmul %164, %166, %cst_54 {dimension_numbers = #tpu.dot_dimension_numbers<[1], [0], [0], [1], [0, 0, 1, 1], [], []>} : vector<16x32xf32>, vector<32x64xf32>, vector<16x64xf32> -> vector<16x64xf32>
    %c0_55 = arith.constant 0 : index
    %c0_56 = arith.constant 0 : index
    %c0_57 = arith.constant 0 : index
    %168 = vector.load %arg10[%c0_55, %c0_56, %c0_57] : memref<2x1x64xf32, #tpu.memory_space<vmem>>, vector<1x1x64xf32>
    %169 = vector.shape_cast %168 : vector<1x1x64xf32> to vector<1x64xf32>
    %170 = vector.broadcast %169 : vector<1x64xf32> to vector<16x64xf32>
    %171 = arith.addf %167, %170 : vector<16x64xf32>
    %cst_58 = arith.constant 5.000000e-01 : f32
    %172 = vector.broadcast %cst_58 : f32 to vector<16x64xf32>
    %173 = arith.mulf %172, %171 : vector<16x64xf32>
    %cst_59 = arith.constant 0.707106769 : f32
    %174 = vector.broadcast %cst_59 : f32 to vector<16x64xf32>
    %175 = arith.mulf %171, %174 : vector<16x64xf32>
    %176 = math.erf %175 : vector<16x64xf32>
    %cst_60 = arith.constant 1.000000e+00 : f32
    %177 = vector.broadcast %cst_60 : f32 to vector<16x64xf32>
    %178 = arith.addf %177, %176 : vector<16x64xf32>
    %179 = arith.mulf %173, %178 : vector<16x64xf32>
    %c0_61 = arith.constant 0 : index
    %c0_62 = arith.constant 0 : index
    %c0_63 = arith.constant 0 : index
    %180 = vector.load %arg11[%c0_61, %c0_62, %c0_63] : memref<2x64x32xf32, #tpu.memory_space<vmem>>, vector<1x64x32xf32>
    %181 = vector.shape_cast %180 : vector<1x64x32xf32> to vector<64x32xf32>
    %cst_64 = arith.constant dense<0.000000e+00> : vector<16x32xf32>
    %182 = tpu.matmul %179, %181, %cst_64 {dimension_numbers = #tpu.dot_dimension_numbers<[1], [0], [0], [1], [0, 0, 1, 1], [], []>} : vector<16x64xf32>, vector<64x32xf32>, vector<16x32xf32> -> vector<16x32xf32>
    %c0_65 = arith.constant 0 : index
    %c0_66 = arith.constant 0 : index
    %c0_67 = arith.constant 0 : index
    %183 = vector.load %arg12[%c0_65, %c0_66, %c0_67] : memref<2x1x32xf32, #tpu.memory_space<vmem>>, vector<1x1x32xf32>
    %184 = vector.shape_cast %183 : vector<1x1x32xf32> to vector<1x32xf32>
    %185 = vector.broadcast %184 : vector<1x32xf32> to vector<16x32xf32>
    %186 = arith.addf %182, %185 : vector<16x32xf32>
    %c0_68 = arith.constant 0 : index
    %c0_69 = arith.constant 0 : index
    %c0_70 = arith.constant 0 : index
    %187 = vector.load %arg13[%c0_68, %c0_69, %c0_70] : memref<2x2x32xf32, #tpu.memory_space<vmem>>, vector<1x2x32xf32>
    %188 = vector.shape_cast %187 : vector<1x2x32xf32> to vector<2x32xf32>
    %189 = arith.addf %164, %186 : vector<16x32xf32>
    %190 = vector.extract_strided_slice %188 {offsets = [0, 0], sizes = [1, 32], strides = [1, 1]} : vector<2x32xf32> to vector<1x32xf32>
    %191 = vector.extract_strided_slice %188 {offsets = [1, 0], sizes = [1, 32], strides = [1, 1]} : vector<2x32xf32> to vector<1x32xf32>
    %cst_71 = arith.constant dense<0.000000e+00> : vector<16xf32>
    %192 = vector.multi_reduction <add>, %189, %cst_71 [1] : vector<16x32xf32> to vector<16xf32>
    %193 = vector.shape_cast %192 : vector<16xf32> to vector<16x1xf32>
    %cst_72 = arith.constant 3.200000e+01 : f32
    %194 = vector.broadcast %cst_72 : f32 to vector<16x1xf32>
    %195 = arith.divf %193, %194 : vector<16x1xf32>
    %196 = vector.broadcast %195 : vector<16x1xf32> to vector<16x32xf32>
    %197 = arith.subf %189, %196 : vector<16x32xf32>
    %198 = arith.mulf %197, %197 : vector<16x32xf32>
    %cst_73 = arith.constant dense<0.000000e+00> : vector<16xf32>
    %199 = vector.multi_reduction <add>, %198, %cst_73 [1] : vector<16x32xf32> to vector<16xf32>
    %200 = vector.shape_cast %199 : vector<16xf32> to vector<16x1xf32>
    %cst_74 = arith.constant 3.200000e+01 : f32
    %201 = vector.broadcast %cst_74 : f32 to vector<16x1xf32>
    %202 = arith.divf %200, %201 : vector<16x1xf32>
    %203 = vector.broadcast %195 : vector<16x1xf32> to vector<16x32xf32>
    %204 = arith.subf %189, %203 : vector<16x32xf32>
    %cst_75 = arith.constant 9.99999996E-13 : f32
    %205 = vector.broadcast %cst_75 : f32 to vector<16x1xf32>
    %206 = arith.addf %202, %205 : vector<16x1xf32>
    %207 = math.rsqrt %206 : vector<16x1xf32>
    %208 = vector.broadcast %207 : vector<16x1xf32> to vector<16x32xf32>
    %209 = arith.mulf %204, %208 : vector<16x32xf32>
    %210 = vector.broadcast %190 : vector<1x32xf32> to vector<16x32xf32>
    %211 = arith.mulf %209, %210 : vector<16x32xf32>
    %212 = vector.broadcast %191 : vector<1x32xf32> to vector<16x32xf32>
    %213 = arith.addf %211, %212 : vector<16x32xf32>
    %c1 = arith.constant 1 : index
    %c0_76 = arith.constant 0 : index
    %c0_77 = arith.constant 0 : index
    %214 = vector.load %arg4[%c1, %c0_76, %c0_77] : memref<2x32x96xf32, #tpu.memory_space<vmem>>, vector<1x32x96xf32>
    %215 = vector.shape_cast %214 : vector<1x32x96xf32> to vector<32x96xf32>
    %cst_78 = arith.constant dense<0.000000e+00> : vector<16x96xf32>
    %216 = tpu.matmul %213, %215, %cst_78 {dimension_numbers = #tpu.dot_dimension_numbers<[1], [0], [0], [1], [0, 0, 1, 1], [], []>} : vector<16x32xf32>, vector<32x96xf32>, vector<16x96xf32> -> vector<16x96xf32>
    %c1_79 = arith.constant 1 : index
    %c0_80 = arith.constant 0 : index
    %c0_81 = arith.constant 0 : index
    %217 = vector.load %arg5[%c1_79, %c0_80, %c0_81] : memref<2x1x96xf32, #tpu.memory_space<vmem>>, vector<1x1x96xf32>
    %218 = vector.shape_cast %217 : vector<1x1x96xf32> to vector<1x96xf32>
    %219 = vector.broadcast %218 : vector<1x96xf32> to vector<16x96xf32>
    %220 = arith.addf %216, %219 : vector<16x96xf32>
    %221 = vector.extract_strided_slice %220 {offsets = [0, 0], sizes = [16, 8], strides = [1, 1]} : vector<16x96xf32> to vector<16x8xf32>
    %222 = vector.shape_cast %221 : vector<16x8xf32> to vector<2x8x8xf32>
    %223 = vector.extract_strided_slice %220 {offsets = [0, 32], sizes = [16, 8], strides = [1, 1]} : vector<16x96xf32> to vector<16x8xf32>
    %224 = vector.shape_cast %223 : vector<16x8xf32> to vector<2x8x8xf32>
    %225 = vector.extract_strided_slice %220 {offsets = [0, 64], sizes = [16, 8], strides = [1, 1]} : vector<16x96xf32> to vector<16x8xf32>
    %226 = vector.shape_cast %225 : vector<16x8xf32> to vector<2x8x8xf32>
    "tpu.trace_start"() <{level = 10 : i32, message = "bqd,bkd->bqk"}> : () -> ()
    %cst_82 = arith.constant dense<0.000000e+00> : vector<2x8x8xf32>
    %227 = tpu.matmul %222, %224, %cst_82 {dimension_numbers = #tpu.dot_dimension_numbers<[2], [2], [1], [1], [0, 0, 0, 1, 1, 1], [0], [0]>} : vector<2x8x8xf32>, vector<2x8x8xf32>, vector<2x8x8xf32> -> vector<2x8x8xf32>
    "tpu.trace_stop"() : () -> ()
    %cst_83 = arith.constant 0.353553385 : f32
    %228 = vector.broadcast %cst_83 : f32 to vector<2x8x8xf32>
    %229 = arith.mulf %227, %228 : vector<2x8x8xf32>
    %230 = vector.shape_cast %26 : vector<2x8xf32> to vector<2x1x8xf32>
    %231 = vector.broadcast %230 : vector<2x1x8xf32> to vector<2x8x8xf32>
    %232 = arith.addf %229, %231 : vector<2x8x8xf32>
    %cst_84 = arith.constant dense<0xFF800000> : vector<2x8xf32>
    %233 = vector.multi_reduction <maximumf>, %232, %cst_84 [2] : vector<2x8x8xf32> to vector<2x8xf32>
    %234 = vector.shape_cast %233 : vector<2x8xf32> to vector<2x8x1xf32>
    %235 = vector.broadcast %234 : vector<2x8x1xf32> to vector<2x8x8xf32>
    %236 = arith.subf %232, %235 : vector<2x8x8xf32>
    %237 = math.exp %236 : vector<2x8x8xf32>
    %cst_85 = arith.constant dense<0.000000e+00> : vector<2x8xf32>
    %238 = vector.multi_reduction <add>, %237, %cst_85 [2] : vector<2x8x8xf32> to vector<2x8xf32>
    %239 = vector.shape_cast %238 : vector<2x8xf32> to vector<2x8x1xf32>
    %240 = tpu.reciprocal %239 {approx = true} : vector<2x8x1xf32> -> vector<2x8x1xf32>
    %241 = vector.broadcast %240 : vector<2x8x1xf32> to vector<2x8x8xf32>
    %242 = arith.mulf %237, %241 : vector<2x8x8xf32>
    "tpu.trace_start"() <{level = 10 : i32, message = "bqk,bkd->bqd"}> : () -> ()
    %cst_86 = arith.constant dense<0.000000e+00> : vector<2x8x8xf32>
    %243 = tpu.matmul %242, %226, %cst_86 {dimension_numbers = #tpu.dot_dimension_numbers<[2], [1], [1], [2], [0, 0, 0, 1, 1, 2], [0], [0]>} : vector<2x8x8xf32>, vector<2x8x8xf32>, vector<2x8x8xf32> -> vector<2x8x8xf32>
    "tpu.trace_stop"() : () -> ()
    %244 = vector.shape_cast %243 : vector<2x8x8xf32> to vector<16x8xf32>
    %245 = vector.extract_strided_slice %220 {offsets = [0, 8], sizes = [16, 8], strides = [1, 1]} : vector<16x96xf32> to vector<16x8xf32>
    %246 = vector.shape_cast %245 : vector<16x8xf32> to vector<2x8x8xf32>
    %247 = vector.extract_strided_slice %220 {offsets = [0, 40], sizes = [16, 8], strides = [1, 1]} : vector<16x96xf32> to vector<16x8xf32>
    %248 = vector.shape_cast %247 : vector<16x8xf32> to vector<2x8x8xf32>
    %249 = vector.extract_strided_slice %220 {offsets = [0, 72], sizes = [16, 8], strides = [1, 1]} : vector<16x96xf32> to vector<16x8xf32>
    %250 = vector.shape_cast %249 : vector<16x8xf32> to vector<2x8x8xf32>
    "tpu.trace_start"() <{level = 10 : i32, message = "bqd,bkd->bqk"}> : () -> ()
    %cst_87 = arith.constant dense<0.000000e+00> : vector<2x8x8xf32>
    %251 = tpu.matmul %246, %248, %cst_87 {dimension_numbers = #tpu.dot_dimension_numbers<[2], [2], [1], [1], [0, 0, 0, 1, 1, 1], [0], [0]>} : vector<2x8x8xf32>, vector<2x8x8xf32>, vector<2x8x8xf32> -> vector<2x8x8xf32>
    "tpu.trace_stop"() : () -> ()
    %cst_88 = arith.constant 0.353553385 : f32
    %252 = vector.broadcast %cst_88 : f32 to vector<2x8x8xf32>
    %253 = arith.mulf %251, %252 : vector<2x8x8xf32>
    %254 = vector.shape_cast %26 : vector<2x8xf32> to vector<2x1x8xf32>
    %255 = vector.broadcast %254 : vector<2x1x8xf32> to vector<2x8x8xf32>
    %256 = arith.addf %253, %255 : vector<2x8x8xf32>
    %cst_89 = arith.constant dense<0xFF800000> : vector<2x8xf32>
    %257 = vector.multi_reduction <maximumf>, %256, %cst_89 [2] : vector<2x8x8xf32> to vector<2x8xf32>
    %258 = vector.shape_cast %257 : vector<2x8xf32> to vector<2x8x1xf32>
    %259 = vector.broadcast %258 : vector<2x8x1xf32> to vector<2x8x8xf32>
    %260 = arith.subf %256, %259 : vector<2x8x8xf32>
    %261 = math.exp %260 : vector<2x8x8xf32>
    %cst_90 = arith.constant dense<0.000000e+00> : vector<2x8xf32>
    %262 = vector.multi_reduction <add>, %261, %cst_90 [2] : vector<2x8x8xf32> to vector<2x8xf32>
    %263 = vector.shape_cast %262 : vector<2x8xf32> to vector<2x8x1xf32>
    %264 = tpu.reciprocal %263 {approx = true} : vector<2x8x1xf32> -> vector<2x8x1xf32>
    %265 = vector.broadcast %264 : vector<2x8x1xf32> to vector<2x8x8xf32>
    %266 = arith.mulf %261, %265 : vector<2x8x8xf32>
    "tpu.trace_start"() <{level = 10 : i32, message = "bqk,bkd->bqd"}> : () -> ()
    %cst_91 = arith.constant dense<0.000000e+00> : vector<2x8x8xf32>
    %267 = tpu.matmul %266, %250, %cst_91 {dimension_numbers = #tpu.dot_dimension_numbers<[2], [1], [1], [2], [0, 0, 0, 1, 1, 2], [0], [0]>} : vector<2x8x8xf32>, vector<2x8x8xf32>, vector<2x8x8xf32> -> vector<2x8x8xf32>
    "tpu.trace_stop"() : () -> ()
    %268 = vector.shape_cast %267 : vector<2x8x8xf32> to vector<16x8xf32>
    %269 = vector.extract_strided_slice %220 {offsets = [0, 16], sizes = [16, 8], strides = [1, 1]} : vector<16x96xf32> to vector<16x8xf32>
    %270 = vector.shape_cast %269 : vector<16x8xf32> to vector<2x8x8xf32>
    %271 = vector.extract_strided_slice %220 {offsets = [0, 48], sizes = [16, 8], strides = [1, 1]} : vector<16x96xf32> to vector<16x8xf32>
    %272 = vector.shape_cast %271 : vector<16x8xf32> to vector<2x8x8xf32>
    %273 = vector.extract_strided_slice %220 {offsets = [0, 80], sizes = [16, 8], strides = [1, 1]} : vector<16x96xf32> to vector<16x8xf32>
    %274 = vector.shape_cast %273 : vector<16x8xf32> to vector<2x8x8xf32>
    "tpu.trace_start"() <{level = 10 : i32, message = "bqd,bkd->bqk"}> : () -> ()
    %cst_92 = arith.constant dense<0.000000e+00> : vector<2x8x8xf32>
    %275 = tpu.matmul %270, %272, %cst_92 {dimension_numbers = #tpu.dot_dimension_numbers<[2], [2], [1], [1], [0, 0, 0, 1, 1, 1], [0], [0]>} : vector<2x8x8xf32>, vector<2x8x8xf32>, vector<2x8x8xf32> -> vector<2x8x8xf32>
    "tpu.trace_stop"() : () -> ()
    %cst_93 = arith.constant 0.353553385 : f32
    %276 = vector.broadcast %cst_93 : f32 to vector<2x8x8xf32>
    %277 = arith.mulf %275, %276 : vector<2x8x8xf32>
    %278 = vector.shape_cast %26 : vector<2x8xf32> to vector<2x1x8xf32>
    %279 = vector.broadcast %278 : vector<2x1x8xf32> to vector<2x8x8xf32>
    %280 = arith.addf %277, %279 : vector<2x8x8xf32>
    %cst_94 = arith.constant dense<0xFF800000> : vector<2x8xf32>
    %281 = vector.multi_reduction <maximumf>, %280, %cst_94 [2] : vector<2x8x8xf32> to vector<2x8xf32>
    %282 = vector.shape_cast %281 : vector<2x8xf32> to vector<2x8x1xf32>
    %283 = vector.broadcast %282 : vector<2x8x1xf32> to vector<2x8x8xf32>
    %284 = arith.subf %280, %283 : vector<2x8x8xf32>
    %285 = math.exp %284 : vector<2x8x8xf32>
    %cst_95 = arith.constant dense<0.000000e+00> : vector<2x8xf32>
    %286 = vector.multi_reduction <add>, %285, %cst_95 [2] : vector<2x8x8xf32> to vector<2x8xf32>
    %287 = vector.shape_cast %286 : vector<2x8xf32> to vector<2x8x1xf32>
    %288 = tpu.reciprocal %287 {approx = true} : vector<2x8x1xf32> -> vector<2x8x1xf32>
    %289 = vector.broadcast %288 : vector<2x8x1xf32> to vector<2x8x8xf32>
    %290 = arith.mulf %285, %289 : vector<2x8x8xf32>
    "tpu.trace_start"() <{level = 10 : i32, message = "bqk,bkd->bqd"}> : () -> ()
    %cst_96 = arith.constant dense<0.000000e+00> : vector<2x8x8xf32>
    %291 = tpu.matmul %290, %274, %cst_96 {dimension_numbers = #tpu.dot_dimension_numbers<[2], [1], [1], [2], [0, 0, 0, 1, 1, 2], [0], [0]>} : vector<2x8x8xf32>, vector<2x8x8xf32>, vector<2x8x8xf32> -> vector<2x8x8xf32>
    "tpu.trace_stop"() : () -> ()
    %292 = vector.shape_cast %291 : vector<2x8x8xf32> to vector<16x8xf32>
    %293 = vector.extract_strided_slice %220 {offsets = [0, 24], sizes = [16, 8], strides = [1, 1]} : vector<16x96xf32> to vector<16x8xf32>
    %294 = vector.shape_cast %293 : vector<16x8xf32> to vector<2x8x8xf32>
    %295 = vector.extract_strided_slice %220 {offsets = [0, 56], sizes = [16, 8], strides = [1, 1]} : vector<16x96xf32> to vector<16x8xf32>
    %296 = vector.shape_cast %295 : vector<16x8xf32> to vector<2x8x8xf32>
    %297 = vector.extract_strided_slice %220 {offsets = [0, 88], sizes = [16, 8], strides = [1, 1]} : vector<16x96xf32> to vector<16x8xf32>
    %298 = vector.shape_cast %297 : vector<16x8xf32> to vector<2x8x8xf32>
    "tpu.trace_start"() <{level = 10 : i32, message = "bqd,bkd->bqk"}> : () -> ()
    %cst_97 = arith.constant dense<0.000000e+00> : vector<2x8x8xf32>
    %299 = tpu.matmul %294, %296, %cst_97 {dimension_numbers = #tpu.dot_dimension_numbers<[2], [2], [1], [1], [0, 0, 0, 1, 1, 1], [0], [0]>} : vector<2x8x8xf32>, vector<2x8x8xf32>, vector<2x8x8xf32> -> vector<2x8x8xf32>
    "tpu.trace_stop"() : () -> ()
    %cst_98 = arith.constant 0.353553385 : f32
    %300 = vector.broadcast %cst_98 : f32 to vector<2x8x8xf32>
    %301 = arith.mulf %299, %300 : vector<2x8x8xf32>
    %302 = vector.shape_cast %26 : vector<2x8xf32> to vector<2x1x8xf32>
    %303 = vector.broadcast %302 : vector<2x1x8xf32> to vector<2x8x8xf32>
    %304 = arith.addf %301, %303 : vector<2x8x8xf32>
    %cst_99 = arith.constant dense<0xFF800000> : vector<2x8xf32>
    %305 = vector.multi_reduction <maximumf>, %304, %cst_99 [2] : vector<2x8x8xf32> to vector<2x8xf32>
    %306 = vector.shape_cast %305 : vector<2x8xf32> to vector<2x8x1xf32>
    %307 = vector.broadcast %306 : vector<2x8x1xf32> to vector<2x8x8xf32>
    %308 = arith.subf %304, %307 : vector<2x8x8xf32>
    %309 = math.exp %308 : vector<2x8x8xf32>
    %cst_100 = arith.constant dense<0.000000e+00> : vector<2x8xf32>
    %310 = vector.multi_reduction <add>, %309, %cst_100 [2] : vector<2x8x8xf32> to vector<2x8xf32>
    %311 = vector.shape_cast %310 : vector<2x8xf32> to vector<2x8x1xf32>
    %312 = tpu.reciprocal %311 {approx = true} : vector<2x8x1xf32> -> vector<2x8x1xf32>
    %313 = vector.broadcast %312 : vector<2x8x1xf32> to vector<2x8x8xf32>
    %314 = arith.mulf %309, %313 : vector<2x8x8xf32>
    "tpu.trace_start"() <{level = 10 : i32, message = "bqk,bkd->bqd"}> : () -> ()
    %cst_101 = arith.constant dense<0.000000e+00> : vector<2x8x8xf32>
    %315 = tpu.matmul %314, %298, %cst_101 {dimension_numbers = #tpu.dot_dimension_numbers<[2], [1], [1], [2], [0, 0, 0, 1, 1, 2], [0], [0]>} : vector<2x8x8xf32>, vector<2x8x8xf32>, vector<2x8x8xf32> -> vector<2x8x8xf32>
    "tpu.trace_stop"() : () -> ()
    %316 = vector.shape_cast %315 : vector<2x8x8xf32> to vector<16x8xf32>
    %317 = tpu.concatenate %244, %268, %292, %316 in 1 : vector<16x8xf32>, vector<16x8xf32>, vector<16x8xf32>, vector<16x8xf32> -> vector<16x32xf32>
    %c1_102 = arith.constant 1 : index
    %c0_103 = arith.constant 0 : index
    %c0_104 = arith.constant 0 : index
    %318 = vector.load %arg6[%c1_102, %c0_103, %c0_104] : memref<2x32x32xf32, #tpu.memory_space<vmem>>, vector<1x32x32xf32>
    %319 = vector.shape_cast %318 : vector<1x32x32xf32> to vector<32x32xf32>
    %cst_105 = arith.constant dense<0.000000e+00> : vector<16x32xf32>
    %320 = tpu.matmul %317, %319, %cst_105 {dimension_numbers = #tpu.dot_dimension_numbers<[1], [0], [0], [1], [0, 0, 1, 1], [], []>} : vector<16x32xf32>, vector<32x32xf32>, vector<16x32xf32> -> vector<16x32xf32>
    %c1_106 = arith.constant 1 : index
    %c0_107 = arith.constant 0 : index
    %c0_108 = arith.constant 0 : index
    %321 = vector.load %arg7[%c1_106, %c0_107, %c0_108] : memref<2x1x32xf32, #tpu.memory_space<vmem>>, vector<1x1x32xf32>
    %322 = vector.shape_cast %321 : vector<1x1x32xf32> to vector<1x32xf32>
    %323 = vector.broadcast %322 : vector<1x32xf32> to vector<16x32xf32>
    %324 = arith.addf %320, %323 : vector<16x32xf32>
    %c1_109 = arith.constant 1 : index
    %c0_110 = arith.constant 0 : index
    %c0_111 = arith.constant 0 : index
    %325 = vector.load %arg8[%c1_109, %c0_110, %c0_111] : memref<2x2x32xf32, #tpu.memory_space<vmem>>, vector<1x2x32xf32>
    %326 = vector.shape_cast %325 : vector<1x2x32xf32> to vector<2x32xf32>
    %327 = arith.addf %213, %324 : vector<16x32xf32>
    %328 = vector.extract_strided_slice %326 {offsets = [0, 0], sizes = [1, 32], strides = [1, 1]} : vector<2x32xf32> to vector<1x32xf32>
    %329 = vector.extract_strided_slice %326 {offsets = [1, 0], sizes = [1, 32], strides = [1, 1]} : vector<2x32xf32> to vector<1x32xf32>
    %cst_112 = arith.constant dense<0.000000e+00> : vector<16xf32>
    %330 = vector.multi_reduction <add>, %327, %cst_112 [1] : vector<16x32xf32> to vector<16xf32>
    %331 = vector.shape_cast %330 : vector<16xf32> to vector<16x1xf32>
    %cst_113 = arith.constant 3.200000e+01 : f32
    %332 = vector.broadcast %cst_113 : f32 to vector<16x1xf32>
    %333 = arith.divf %331, %332 : vector<16x1xf32>
    %334 = vector.broadcast %333 : vector<16x1xf32> to vector<16x32xf32>
    %335 = arith.subf %327, %334 : vector<16x32xf32>
    %336 = arith.mulf %335, %335 : vector<16x32xf32>
    %cst_114 = arith.constant dense<0.000000e+00> : vector<16xf32>
    %337 = vector.multi_reduction <add>, %336, %cst_114 [1] : vector<16x32xf32> to vector<16xf32>
    %338 = vector.shape_cast %337 : vector<16xf32> to vector<16x1xf32>
    %cst_115 = arith.constant 3.200000e+01 : f32
    %339 = vector.broadcast %cst_115 : f32 to vector<16x1xf32>
    %340 = arith.divf %338, %339 : vector<16x1xf32>
    %341 = vector.broadcast %333 : vector<16x1xf32> to vector<16x32xf32>
    %342 = arith.subf %327, %341 : vector<16x32xf32>
    %cst_116 = arith.constant 9.99999996E-13 : f32
    %343 = vector.broadcast %cst_116 : f32 to vector<16x1xf32>
    %344 = arith.addf %340, %343 : vector<16x1xf32>
    %345 = math.rsqrt %344 : vector<16x1xf32>
    %346 = vector.broadcast %345 : vector<16x1xf32> to vector<16x32xf32>
    %347 = arith.mulf %342, %346 : vector<16x32xf32>
    %348 = vector.broadcast %328 : vector<1x32xf32> to vector<16x32xf32>
    %349 = arith.mulf %347, %348 : vector<16x32xf32>
    %350 = vector.broadcast %329 : vector<1x32xf32> to vector<16x32xf32>
    %351 = arith.addf %349, %350 : vector<16x32xf32>
    %c1_117 = arith.constant 1 : index
    %c0_118 = arith.constant 0 : index
    %c0_119 = arith.constant 0 : index
    %352 = vector.load %arg9[%c1_117, %c0_118, %c0_119] : memref<2x32x64xf32, #tpu.memory_space<vmem>>, vector<1x32x64xf32>
    %353 = vector.shape_cast %352 : vector<1x32x64xf32> to vector<32x64xf32>
    %cst_120 = arith.constant dense<0.000000e+00> : vector<16x64xf32>
    %354 = tpu.matmul %351, %353, %cst_120 {dimension_numbers = #tpu.dot_dimension_numbers<[1], [0], [0], [1], [0, 0, 1, 1], [], []>} : vector<16x32xf32>, vector<32x64xf32>, vector<16x64xf32> -> vector<16x64xf32>
    %c1_121 = arith.constant 1 : index
    %c0_122 = arith.constant 0 : index
    %c0_123 = arith.constant 0 : index
    %355 = vector.load %arg10[%c1_121, %c0_122, %c0_123] : memref<2x1x64xf32, #tpu.memory_space<vmem>>, vector<1x1x64xf32>
    %356 = vector.shape_cast %355 : vector<1x1x64xf32> to vector<1x64xf32>
    %357 = vector.broadcast %356 : vector<1x64xf32> to vector<16x64xf32>
    %358 = arith.addf %354, %357 : vector<16x64xf32>
    %cst_124 = arith.constant 5.000000e-01 : f32
    %359 = vector.broadcast %cst_124 : f32 to vector<16x64xf32>
    %360 = arith.mulf %359, %358 : vector<16x64xf32>
    %cst_125 = arith.constant 0.707106769 : f32
    %361 = vector.broadcast %cst_125 : f32 to vector<16x64xf32>
    %362 = arith.mulf %358, %361 : vector<16x64xf32>
    %363 = math.erf %362 : vector<16x64xf32>
    %cst_126 = arith.constant 1.000000e+00 : f32
    %364 = vector.broadcast %cst_126 : f32 to vector<16x64xf32>
    %365 = arith.addf %364, %363 : vector<16x64xf32>
    %366 = arith.mulf %360, %365 : vector<16x64xf32>
    %c1_127 = arith.constant 1 : index
    %c0_128 = arith.constant 0 : index
    %c0_129 = arith.constant 0 : index
    %367 = vector.load %arg11[%c1_127, %c0_128, %c0_129] : memref<2x64x32xf32, #tpu.memory_space<vmem>>, vector<1x64x32xf32>
    %368 = vector.shape_cast %367 : vector<1x64x32xf32> to vector<64x32xf32>
    %cst_130 = arith.constant dense<0.000000e+00> : vector<16x32xf32>
    %369 = tpu.matmul %366, %368, %cst_130 {dimension_numbers = #tpu.dot_dimension_numbers<[1], [0], [0], [1], [0, 0, 1, 1], [], []>} : vector<16x64xf32>, vector<64x32xf32>, vector<16x32xf32> -> vector<16x32xf32>
    %c1_131 = arith.constant 1 : index
    %c0_132 = arith.constant 0 : index
    %c0_133 = arith.constant 0 : index
    %370 = vector.load %arg12[%c1_131, %c0_132, %c0_133] : memref<2x1x32xf32, #tpu.memory_space<vmem>>, vector<1x1x32xf32>
    %371 = vector.shape_cast %370 : vector<1x1x32xf32> to vector<1x32xf32>
    %372 = vector.broadcast %371 : vector<1x32xf32> to vector<16x32xf32>
    %373 = arith.addf %369, %372 : vector<16x32xf32>
    %c1_134 = arith.constant 1 : index
    %c0_135 = arith.constant 0 : index
    %c0_136 = arith.constant 0 : index
    %374 = vector.load %arg13[%c1_134, %c0_135, %c0_136] : memref<2x2x32xf32, #tpu.memory_space<vmem>>, vector<1x2x32xf32>
    %375 = vector.shape_cast %374 : vector<1x2x32xf32> to vector<2x32xf32>
    %376 = arith.addf %351, %373 : vector<16x32xf32>
    %377 = vector.extract_strided_slice %375 {offsets = [0, 0], sizes = [1, 32], strides = [1, 1]} : vector<2x32xf32> to vector<1x32xf32>
    %378 = vector.extract_strided_slice %375 {offsets = [1, 0], sizes = [1, 32], strides = [1, 1]} : vector<2x32xf32> to vector<1x32xf32>
    %cst_137 = arith.constant dense<0.000000e+00> : vector<16xf32>
    %379 = vector.multi_reduction <add>, %376, %cst_137 [1] : vector<16x32xf32> to vector<16xf32>
    %380 = vector.shape_cast %379 : vector<16xf32> to vector<16x1xf32>
    %cst_138 = arith.constant 3.200000e+01 : f32
    %381 = vector.broadcast %cst_138 : f32 to vector<16x1xf32>
    %382 = arith.divf %380, %381 : vector<16x1xf32>
    %383 = vector.broadcast %382 : vector<16x1xf32> to vector<16x32xf32>
    %384 = arith.subf %376, %383 : vector<16x32xf32>
    %385 = arith.mulf %384, %384 : vector<16x32xf32>
    %cst_139 = arith.constant dense<0.000000e+00> : vector<16xf32>
    %386 = vector.multi_reduction <add>, %385, %cst_139 [1] : vector<16x32xf32> to vector<16xf32>
    %387 = vector.shape_cast %386 : vector<16xf32> to vector<16x1xf32>
    %cst_140 = arith.constant 3.200000e+01 : f32
    %388 = vector.broadcast %cst_140 : f32 to vector<16x1xf32>
    %389 = arith.divf %387, %388 : vector<16x1xf32>
    %390 = vector.broadcast %382 : vector<16x1xf32> to vector<16x32xf32>
    %391 = arith.subf %376, %390 : vector<16x32xf32>
    %cst_141 = arith.constant 9.99999996E-13 : f32
    %392 = vector.broadcast %cst_141 : f32 to vector<16x1xf32>
    %393 = arith.addf %389, %392 : vector<16x1xf32>
    %394 = math.rsqrt %393 : vector<16x1xf32>
    %395 = vector.broadcast %394 : vector<16x1xf32> to vector<16x32xf32>
    %396 = arith.mulf %391, %395 : vector<16x32xf32>
    %397 = vector.broadcast %377 : vector<1x32xf32> to vector<16x32xf32>
    %398 = arith.mulf %396, %397 : vector<16x32xf32>
    %399 = vector.broadcast %378 : vector<1x32xf32> to vector<16x32xf32>
    %400 = arith.addf %398, %399 : vector<16x32xf32>
    %401 = vector.extract_strided_slice %400 {offsets = [0, 0], sizes = [1, 32], strides = [1, 1]} : vector<16x32xf32> to vector<1x32xf32>
    %402 = vector.extract_strided_slice %400 {offsets = [8, 0], sizes = [1, 32], strides = [1, 1]} : vector<16x32xf32> to vector<1x32xf32>
    %403 = tpu.concatenate %401, %402 in 0 : vector<1x32xf32>, vector<1x32xf32> -> vector<2x32xf32>
    %c0_142 = arith.constant 0 : index
    %c0_143 = arith.constant 0 : index
    %404 = vector.load %arg14[%c0_142, %c0_143] : memref<32x128xf32, #tpu.memory_space<vmem>>, vector<32x128xf32>
    %cst_144 = arith.constant dense<0.000000e+00> : vector<2x128xf32>
    %405 = tpu.matmul %403, %404, %cst_144 {dimension_numbers = #tpu.dot_dimension_numbers<[1], [0], [0], [1], [0, 0, 1, 1], [], []>} : vector<2x32xf32>, vector<32x128xf32>, vector<2x128xf32> -> vector<2x128xf32>
    %c0_145 = arith.constant 0 : index
    %c0_146 = arith.constant 0 : index
    %406 = vector.load %arg15[%c0_145, %c0_146] : memref<1x128xf32, #tpu.memory_space<vmem>>, vector<1x128xf32>
    %407 = vector.broadcast %406 : vector<1x128xf32> to vector<2x128xf32>
    %408 = arith.addf %405, %407 : vector<2x128xf32>
    %c0_147 = arith.constant 0 : index
    %c0_148 = arith.constant 0 : index
    %409 = vector.load %arg16[%c0_147, %c0_148] : memref<2x128xf32, #tpu.memory_space<vmem>>, vector<2x128xf32>
    tpu.vector_store %arg16[%c0_147, %c0_148], %408 {strides = array<i32>} : memref<2x128xf32, #tpu.memory_space<vmem>>, vector<2x128xf32>,
    return
  }
  func.func @transform_0(%arg0: i32) -> (i32, i32) {
    %c0_i32 = arith.constant 0 : i32
    %c0_i32_0 = arith.constant 0 : i32
    %c0_i32_1 = arith.constant 0 : i32
    return %c0_i32, %c0_i32_0 : i32, i32
  }
  func.func @transform_1(%arg0: i32) -> (i32, i32) {
    %c0_i32 = arith.constant 0 : i32
    %c0_i32_0 = arith.constant 0 : i32
    %c0_i32_1 = arith.constant 0 : i32
    return %c0_i32, %c0_i32_0 : i32, i32
  }
  func.func @transform_2(%arg0: i32) -> (i32, i32) {
    %c0_i32 = arith.constant 0 : i32
    %c0_i32_0 = arith.constant 0 : i32
    %c0_i32_1 = arith.constant 0 : i32
    return %c0_i32, %c0_i32_0 : i32, i32
  }
  func.func @transform_3(%arg0: i32) -> (i32, i32, i32) {
    %c0_i32 = arith.constant 0 : i32
    %c0_i32_0 = arith.constant 0 : i32
    %c0_i32_1 = arith.constant 0 : i32
    %c0_i32_2 = arith.constant 0 : i32
    return %c0_i32, %c0_i32_0, %c0_i32_1 : i32, i32, i32
  }
  func.func @transform_4(%arg0: i32) -> (i32, i32, i32) {
    %c0_i32 = arith.constant 0 : i32
    %c0_i32_0 = arith.constant 0 : i32
    %c0_i32_1 = arith.constant 0 : i32
    %c0_i32_2 = arith.constant 0 : i32
    return %c0_i32, %c0_i32_0, %c0_i32_1 : i32, i32, i32
  }
  func.func @transform_5(%arg0: i32) -> (i32, i32, i32) {
    %c0_i32 = arith.constant 0 : i32
    %c0_i32_0 = arith.constant 0 : i32
    %c0_i32_1 = arith.constant 0 : i32
    %c0_i32_2 = arith.constant 0 : i32
    return %c0_i32, %c0_i32_0, %c0_i32_1 : i32, i32, i32
  }
  func.func @transform_6(%arg0: i32) -> (i32, i32, i32) {
    %c0_i32 = arith.constant 0 : i32
    %c0_i32_0 = arith.constant 0 : i32
    %c0_i32_1 = arith.constant 0 : i32
    %c0_i32_2 = arith.constant 0 : i32
    return %c0_i32, %c0_i32_0, %c0_i32_1 : i32, i32, i32
  }
  func.func @transform_7(%arg0: i32) -> (i32, i32, i32) {
    %c0_i32 = arith.constant 0 : i32
    %c0_i32_0 = arith.constant 0 : i32
    %c0_i32_1 = arith.constant 0 : i32
    %c0_i32_2 = arith.constant 0 : i32
    return %c0_i32, %c0_i32_0, %c0_i32_1 : i32, i32, i32
  }
  func.func @transform_8(%arg0: i32) -> (i32, i32, i32) {
    %c0_i32 = arith.constant 0 : i32
    %c0_i32_0 = arith.constant 0 : i32
    %c0_i32_1 = arith.constant 0 : i32
    %c0_i32_2 = arith.constant 0 : i32
    return %c0_i32, %c0_i32_0, %c0_i32_1 : i32, i32, i32
  }
  func.func @transform_9(%arg0: i32) -> (i32, i32, i32) {
    %c0_i32 = arith.constant 0 : i32
    %c0_i32_0 = arith.constant 0 : i32
    %c0_i32_1 = arith.constant 0 : i32
    %c0_i32_2 = arith.constant 0 : i32
    return %c0_i32, %c0_i32_0, %c0_i32_1 : i32, i32, i32
  }
  func.func @transform_10(%arg0: i32) -> (i32, i32, i32) {
    %c0_i32 = arith.constant 0 : i32
    %c0_i32_0 = arith.constant 0 : i32
    %c0_i32_1 = arith.constant 0 : i32
    %c0_i32_2 = arith.constant 0 : i32
    return %c0_i32, %c0_i32_0, %c0_i32_1 : i32, i32, i32
  }
  func.func @transform_11(%arg0: i32) -> (i32, i32, i32) {
    %c0_i32 = arith.constant 0 : i32
    %c0_i32_0 = arith.constant 0 : i32
    %c0_i32_1 = arith.constant 0 : i32
    %c0_i32_2 = arith.constant 0 : i32
    return %c0_i32, %c0_i32_0, %c0_i32_1 : i32, i32, i32
  }
  func.func @transform_12(%arg0: i32) -> (i32, i32, i32) {
    %c0_i32 = arith.constant 0 : i32
    %c0_i32_0 = arith.constant 0 : i32
    %c0_i32_1 = arith.constant 0 : i32
    %c0_i32_2 = arith.constant 0 : i32
    return %c0_i32, %c0_i32_0, %c0_i32_1 : i32, i32, i32
  }
  func.func @transform_13(%arg0: i32) -> (i32, i32) {
    %c0_i32 = arith.constant 0 : i32
    %c0_i32_0 = arith.constant 0 : i32
    %c0_i32_1 = arith.constant 0 : i32
    return %c0_i32, %c0_i32_0 : i32, i32
  }
  func.func @transform_14(%arg0: i32) -> (i32, i32) {
    %c0_i32 = arith.constant 0 : i32
    %c0_i32_0 = arith.constant 0 : i32
    %c0_i32_1 = arith.constant 0 : i32
    return %c0_i32, %c0_i32_0 : i32, i32
  }
  func.func @transform_15(%arg0: i32) -> (i32, i32) {
    %c0_i32 = arith.constant 0 : i32
    %c0_i32_0 = arith.constant 0 : i32
    %c0_i32_1 = arith.constant 0 : i32
    return %c0_i32, %c0_i32_0 : i32, i32
  }
}

</mosaic_0001>

<bundles_post_ra>
// kernel: bert_for_imdb.1
= control target key start
LH: loop header
LB: loop body
LE: loop exit
PB: predicated region body
PF: predicated region fallthrough
CT: control target
= control target key end

     0   :  { %vm54_vm0 = vcmask 261120   ;;  %s5333_s0 = inlined_call_operand.vmem [shape: f32[16,32], index: 0, kind: input, shape index: {}]   ;;  %s5334_s1 = inlined_call_operand.vmem [shape: f32[2,8], index: 1, kind: input, shape index: {}]   ;;  %s5335_s2 = inlined_call_operand.vmem [shape: f32[2,32], index: 2, kind: input, shape index: {}]   ;;  %s5336_s3 = inlined_call_operand.vmem [shape: f32[2,32,96], index: 3, kind: input, shape index: {}]   ;;  %s5337_s4 = inlined_call_operand.vmem [shape: f32[2,1,96], index: 4, kind: input, shape index: {}]   ;;  %s5338_s5 = inlined_call_operand.vmem [shape: f32[2,32,32], index: 5, kind: input, shape index: {}]   ;;  %s5339_s6 = inlined_call_operand.vmem [shape: f32[2,1,32], index: 6, kind: input, shape index: {}]   ;;  %s5340_s7 = inlined_call_operand.vmem [shape: f32[2,2,32], index: 7, kind: input, shape index: {}]   ;;  %s5341_s8 = inlined_call_operand.vmem [shape: f32[2,32,64], index: 8, kind: input, shape index: {}]   ;;  %s5342_s9 = inlined_call_operand.vmem [shape: f32[2,1,64], index: 9, kind: input, shape index: {}]   ;;  %s5343_s10 = inlined_call_operand.vmem [shape: f32[2,64,32], index: 10, kind: input, shape index: {}]   ;;  %s5344_s11 = inlined_call_operand.vmem [shape: f32[2,1,32], index: 11, kind: input, shape index: {}]   ;;  %s5345_s12 = inlined_call_operand.vmem [shape: f32[2,2,32], index: 12, kind: input, shape index: {}]   ;;  %s5346_s13 = inlined_call_operand.vmem [shape: f32[32,128], index: 13, kind: input, shape index: {}]   ;;  %s5347_s14 = inlined_call_operand.vmem [shape: f32[1,128], index: 14, kind: input, shape index: {}]   ;;  %s5348_s15 = inlined_call_operand.hbm [shape: f32[2,128], index: 15, kind: output, shape index: {}]  }
   0x1   :  { %v51_v0 = vld [vmem:[%s5333_s0] sm:$0xff]  ;;  %v52_v1 = vld [vmem:[%s5333_s0 + $0x8] sm:$0xff] }
   0x2   :  { %20 = vsyncpa [#allocation3], 0  ;;  %v55_v2 = vsel %vm54_vm0, %v51_v0, 0.0  ;;  %v58_v3 = vsel %vm54_vm0, %v52_v1, 0.0  ;;  %v95_v14 = vld [vmem:[%s5336_s3] sm:$0xff]  ;;  %v96_v15 = vld [vmem:[%s5336_s3 + $0x8] sm:$0xff]  ;;  %v82_v22 = vlaneseq }
   0x3   :  { %56 = vadd.xlane.f32.xlu0 %v55_v2  ;;  %v97_v16 = vld [vmem:[%s5336_s3 + $0x10] sm:$0xff]  ;;  %v4403_v17 = vpack.c.bf16 %v96_v15, %v95_v14  ;;  %v98_v18 = vld [vmem:[%s5336_s3 + $0x18] sm:$0xff]  ;;  %v53_v29 = vld [vmem:[%s5335_s2] sm:$0x3]  ;;  %v4624_v41 = vmov 0.0   ;;  %vm4625_vm1 = vmmov 0  }
   0x4   :  { %v4407_v19 = vpack.c.bf16 %v98_v18, %v97_v16  ;;  %v83_v26 = vshrl.u32 %v82_v22, 7  ;;  %4139 = vmatprep.subr.mxu1 %v4624_v41  ;;  %4141 = vmatprep.mubr.msk.f32.mxu1 %vm4625_vm1, %v4624_v41  ;;  %v3902_v42 = vld [vmem:[%s5337_s4] ss:$0 sm:$0xff]  ;;  %s4626_s17 = smov 96   ;;  %vm190_vm2 = vcmask 64512   ;;  %s4629_s20 = smov 88  }
   0x5   :  { %4404 = vmatprep.subr.bf16.mxu0 %v4403_v17  ;;  %v4627_v49 = vmov 1966171168   ;;  %v3909_v53 = vld.sshfl [vmem:[%s5334_s1] sm:$0x11 pattern:$0x75316420] }
   0x6   :  { %4406 = vmatpush3.bf16.msra.mxu0 %v4403_v17  ;;  %v4745_v28 = vsub.s32 0, %v83_v26  ;;  %v4750_v30 = vsub.s32 1, %v83_v26  ;;  %v354_v50 = vunpack.c.l.s4 %v4627_v49  ;;  %v352_v54 = vcombine.high %v3909_v53, %v3909_v53  ;;  %s4628_s1 = smov 64   ;;  %s4630_s21 = smov 120  }
   0x7   :  { %59 = vadd.xlane.f32.xlu0 %v58_v3  ;;  %4408 = vmatprep.subr.bf16.mxu0 %v4407_v19  ;;  %s4631_s0 = smov 56   ;;  %s4632_s22 = smov 80   ;;  %vm1584_vm3 = vcmask 195584   ;;  %vm1581_vm4 = vcmask 130048   ;;  %vm1837_vm5 = vcmask 523264   ;;  %vm3801_vm6 = vcmask 1040384  }
   0x8   :  { %v85_v31 = vrot.slane %v53_v29, %v4745_v28  ;;  %v91_v34 = vrot.slane %v53_v29, %v4750_v30  ;;  %v355_v51 = vunpack.c.0.s8 %v354_v50  ;;  %s4633_s23 = smov 112   ;;  %s4634_s24 = smov 48  }
   0x9   :  { %s4635_s25 = smov 72   ;;  %s4636_s26 = smov 104  }
   0xa   :  { %4410 = vmatpush3.bf16.msra.mxu0 %v4407_v19  ;;  %v358_v52 = vsub.s32 %v355_v51, %v83_v26  ;;  %s5353_s27 = smov 40   ;;  %s5351_s28 = smov 8  }
   0xb   :  { %4159 = vmatprep.subr.mxu0 %v4624_v41  ;;  %s5349_s29 = smov 16   ;;  %s5355_s30 = smov 24  }
   0xc   :  { %v359_v55 = vrot.slane %v3909_v53, %v358_v52  ;;  %v366_v56 = vrot.slane %v352_v54, %v358_v52  ;;  %s5360_s2 = smov 24  }
   0xe   :  { %v4795_v57 = vrot.slane %v359_v55, %v4745_v28  ;;  %v4798_v61 = vrot.slane %v366_v56, %v4745_v28 }
  0x90   :  { %v57_v4 = vpop.xlane.xlu0 %56 }
  0x91   :  { %v62_v5 = vmul.f32 0.03125, %v57_v4 }
  0x93   :  { %v64_v6 = vsub.f32 %v51_v0, %v62_v5 }
  0x94   :  { %v60_v7 = vpop.xlane.xlu0 %59 }
  0x95   :  { %v63_v8 = vmul.f32 0.03125, %v60_v7  ;;  %v66_v9 = vmul.f32 %v64_v6, %v64_v6 }
  0x97   :  { %v65_v10 = vsub.f32 %v52_v1, %v63_v8  ;;  %v68_v11 = vsel %vm54_vm0, %v66_v9, 0.0 }
  0x98   :  { %69 = vadd.xlane.f32.xlu1 %v68_v11 }
  0x99   :  { %v67_v12 = vmul.f32 %v65_v10, %v65_v10 }
  0x9b   :  { %v71_v13 = vsel %vm54_vm0, %v67_v12, 0.0 }
  0x9c   :  { %72 = vadd.xlane.f32.xlu1 %v71_v13 }
 0x125   :  { %v70_v20 = vpop.xlane.xlu1 %69 }
 0x126   :  { %v74_v21 = vmul.f32 0.03125, %v70_v20 }
 0x128   :  { %v76_v23 = vadd.f32 1e-12, %v74_v21 }
 0x129   :  { %v73_v24 = vpop.xlane.xlu1 %72 }
 0x12a   :  { %4508 = vrsqrt.f32 %v76_v23  ;;  %v75_v25 = vmul.f32 0.03125, %v73_v24 }
 0x12c   :  { %v77_v27 = vadd.f32 1e-12, %v75_v25 }
 0x12e   :  { %4510 = vrsqrt.f32 %v77_v27 }
 0x134   :  { %v4509_v32 = vpop.eup %4508 }
 0x135   :  { %v80_v33 = vmul.f32 %v4509_v32, %v64_v6 }
 0x137   :  { %v86_v35 = vmul.f32 %v85_v31, %v80_v33 }
 0x138   :  { %v4511_v36 = vpop.eup %4510 }
 0x139   :  { %v81_v37 = vmul.f32 %v4511_v36, %v65_v10  ;;  %v4754_v38 = vadd.f32 %v91_v34, %v86_v35 }
 0x13b   :  { %v87_v39 = vmul.f32 %v85_v31, %v81_v37  ;;  %4136 = vmatprep.mubr.msk.f32.mxu0 %vm54_vm0, %v4754_v38 }
 0x13d   :  { %v4758_v40 = vadd.f32 %v91_v34, %v87_v39 }
 0x13f   :  { %4137 = vmatmul.mubr.msk.f32.vlgmr.msra.gmra.mrb[0].mxu0 %vm54_vm0, %v4758_v40 }
 0x140   :  { %4161 = vmatprep.mubr.msk.f32.mxu0 %vm4625_vm1, %v4624_v41 }
 0x212   :  { %v4138_v43 = vpop.f32.mrb[0].mxu0 }
 0x213   :  { %v4771_v44 = vadd.f32 %v4138_v43, %v3902_v42  ;;  %v178_v45 = vpop.f32.mrb[1].mxu0 }
 0x214   :  { %v4773_v46 = vadd.f32 %v3902_v42, %v178_v45 }
 0x215   :  { %266 = vrot.lane.b32.xlu1 %v4771_v44, %s4626_s17 }
 0x216   :  { %188 = vrot.lane.b32.xlu0 %v4773_v46, %s4626_s17 }
 0x287   :  { %v267_v48 = vpop.permute.xlu1 %266 }
 0x288   :  { %v189_v47 = vpop.permute.xlu0 %188 }
 0x289   :  { %4140 = vmatpush3.xpose.msk.msra.mxu1 %vm190_vm2, %v189_v47 }
 0x28a   :  { %4144 = vmatprep.subr.mxu1 %v4624_v41 }
 0x28c   :  { %4142 = vmatmul.mubr.msk.f32.vlgmr.msra.gmra.mrb[0].mxu1 %vm190_vm2, %v4773_v46 }
 0x28d   :  { %4145 = vmatpush3.xpose.msk.msra.mxu1 %vm190_vm2, %v267_v48  ;;  %4146 = vmatprep.mubr.msk.f32.mxu1 %vm4625_vm1, %v4624_v41 }
 0x28e   :  { %4149 = vmatprep.subr.mxu1 %v4624_v41 }
 0x290   :  { %4147 = vmatmul.mubr.msk.f32.vlgmr.msra.gmra.mrb[2].mxu1 %vm190_vm2, %v4771_v44 }
 0x291   :  { %4151 = vmatprep.mubr.msk.f32.mxu1 %vm4625_vm1, %v4624_v41 }
 0x35f   :  { %v261_v58 = vpop.f32.mrb[0].mxu1 }
 0x360   :  { %v342_v59 = vmul.f32 0.35355338, %v261_v58  ;;  %v4143_v60 = vpop.f32.mrb[1].mxu1 }
 0x362   :  { %v377_v62 = vadd.f32 %v4795_v57, %v342_v59 }
 0x363   :  { %v338_v63 = vpop.f32.mrb[2].mxu1 }
 0x364   :  { %v343_v0 = vmul.f32 0.35355338, %v338_v63  ;;  %v4148_v1 = vpop.f32.mrb[3].mxu1  ;;  %v379_v2 = vsel %vm190_vm2, %v377_v62, -inf }
 0x365   :  { %380 = vmax.xlane.f32.xlu1 %v379_v2 }
 0x366   :  { %v378_v3 = vadd.f32 %v4798_v61, %v343_v0 }
 0x368   :  { %v382_v4 = vsel %vm190_vm2, %v378_v3, -inf }
 0x369   :  { %383 = vmax.xlane.f32.xlu0 %v382_v4 }
 0x376   :  { %477 = vrot.lane.b32.xlu1 %v4771_v44, %s4628_s1 }
 0x37a   :  { %555 = vrot.lane.b32.xlu1 %v4773_v46, %s4629_s20 }
 0x37e   :  { %633 = vrot.lane.b32.xlu1 %v4771_v44, %s4629_s20 }
 0x3f2   :  { %v381_v5 = vpop.xlane.xlu1 %380 }
 0x3f3   :  { %v385_v6 = vsub.f32 %v377_v62, %v381_v5 }
 0x3f5   :  { %v387_v7 = vmul.f32 1.442695, %v385_v6 }
 0x3f6   :  { %v478_v8 = vpop.permute.xlu1 %477  ;;  %v384_v9 = vpop.xlane.xlu0 %383 }
 0x3f7   :  { %4512 = vpow2.f32 %v387_v7  ;;  %v386_v10 = vsub.f32 %v378_v3, %v384_v9 }
 0x3f9   :  { %v389_v11 = vmul.f32 1.442695, %v386_v10 }
 0x3fa   :  { %v556_v12 = vpop.permute.xlu1 %555 }
 0x3fb   :  { %4514 = vpow2.f32 %v389_v11  ;;  %4160 = vmatpush3.xpose.msk.msra.mxu0 %vm190_vm2, %v556_v12 }
 0x3fc   :  { %4169 = vmatprep.subr.mxu0 %v4624_v41 }
 0x3fe   :  { %v634_v17 = vpop.permute.xlu1 %633 }
 0x401   :  { %v4513_v13 = vpop.eup %4512 }
 0x402   :  { %v391_v14 = vsel %vm190_vm2, %v4513_v13, 0.0 }
 0x403   :  { %392 = vadd.xlane.f32.xlu0 %v391_v14 }
 0x405   :  { %v4515_v15 = vpop.eup %4514 }
 0x406   :  { %v394_v16 = vsel %vm190_vm2, %v4515_v15, 0.0 }
 0x407   :  { %395 = vadd.xlane.f32.xlu1 %v394_v16 }
 0x418   :  { %631 = vrot.lane.b32.xlu1 %v4771_v44, %s4630_s21 }
 0x419   :  { %401 = vrot.lane.b32.xlu0 %v4773_v46, %s4628_s1 }
 0x41d   :  { %553 = vrot.lane.b32.xlu0 %v4773_v46, %s4630_s21 }
 0x490   :  { %v393_v18 = vpop.xlane.xlu0 %392 }
 0x491   :  { %4516 = vrcp.f32 %v393_v18 }
 0x494   :  { %v396_v19 = vpop.xlane.xlu1 %395  ;;  %v402_v20 = vpop.permute.xlu0 %401 }
 0x495   :  { %4518 = vrcp.f32 %v396_v19  ;;  %4150 = vmatpush3.msra.mxu1 %v402_v20 }
 0x496   :  { %4154 = vmatprep.subr.mxu1 %v4624_v41 }
 0x498   :  { %v554_v21 = vpop.permute.xlu0 %553  ;;  %v632_v26 = vpop.permute.xlu1 %631 }
 0x499   :  { %4162 = vmatmul.mubr.msk.f32.vlgmr.msra.gmra.mrb[2].mxu0 %vm190_vm2, %v554_v21 }
 0x49a   :  { %4171 = vmatprep.mubr.msk.f32.mxu0 %vm4625_vm1, %v4624_v41 }
 0x49b   :  { %v4517_v22 = vpop.eup %4516 }
 0x49c   :  { %v399_v23 = vmul.f32 %v4517_v22, %v4513_v13 }
 0x49e   :  { %4152 = vmatmul.mubr.msk.f32.vlgmr.msra.gmra.mrb[4].mxu1 %vm190_vm2, %v399_v23 }
 0x49f   :  { %v4519_v24 = vpop.eup %4518  ;;  %4155 = vmatpush3.msra.mxu1 %v478_v8  ;;  %4156 = vmatprep.mubr.msk.f32.mxu1 %vm4625_vm1, %v4624_v41 }
 0x4a0   :  { %v400_v25 = vmul.f32 %v4519_v24, %v4515_v15  ;;  %4164 = vmatprep.subr.mxu1 %v4624_v41 }
 0x4a2   :  { %4157 = vmatmul.mubr.msk.f32.vlgmr.msra.gmra.mrb[6].mxu1 %vm190_vm2, %v400_v25 }
 0x4a3   :  { %4166 = vmatprep.mubr.msk.f32.mxu1 %vm4625_vm1, %v4624_v41 }
 0x4a6   :  { %4165 = vmatpush3.xpose.msk.msra.mxu1 %vm190_vm2, %v634_v17 }
 0x4a7   :  { %4174 = vmatprep.subr.mxu1 %v4624_v41 }
 0x4a9   :  { %4167 = vmatmul.mubr.msk.f32.vlgmr.msra.gmra.mrb[8].mxu1 %vm190_vm2, %v632_v26 }
 0x4aa   :  { %4176 = vmatprep.mubr.msk.f32.mxu1 %vm4625_vm1, %v4624_v41 }
 0x56c   :  { %v627_v27 = vpop.f32.mrb[2].mxu0 }
 0x56d   :  { %v709_v29 = vmul.f32 0.35355338, %v627_v27  ;;  %v4163_v31 = vpop.f32.mrb[3].mxu0 }
 0x56f   :  { %v711_v32 = vadd.f32 %v709_v29, %v4795_v57 }
 0x571   :  { %v4837_v33 = vpop.f32.mrb[4].mxu1  ;;  %v713_v34 = vsel %vm190_vm2, %v711_v32, -inf }
 0x572   :  { %714 = vmax.xlane.f32.xlu0 %v713_v34  ;;  %v4153_v35 = vpop.f32.mrb[5].mxu1 }
 0x575   :  { %v4840_v36 = vpop.f32.mrb[6].mxu1 }
 0x576   :  { %v4158_v37 = vpop.f32.mrb[7].mxu1 }
 0x57c   :  { %v705_v39 = vpop.f32.mrb[8].mxu1 }
 0x57d   :  { %v710_v42 = vmul.f32 0.35355338, %v705_v39  ;;  %v4168_v43 = vpop.f32.mrb[9].mxu1 }
 0x57f   :  { %v712_v45 = vadd.f32 %v710_v42, %v4798_v61 }
 0x581   :  { %v716_v47 = vsel %vm190_vm2, %v712_v45, -inf }
 0x582   :  { %717 = vmax.xlane.f32.xlu1 %v716_v47 }
 0x593   :  { %811 = vrot.lane.b32.xlu1 %v4771_v44, %s4631_s0 }
 0x597   :  { %889 = vrot.lane.b32.xlu1 %v4773_v46, %s4632_s22 }
 0x59b   :  { %967 = vrot.lane.b32.xlu1 %v4771_v44, %s4632_s22 }
 0x59f   :  { %965 = vrot.lane.b32.xlu1 %v4771_v44, %s4633_s23 }
 0x5ff   :  { %v715_v48 = vpop.xlane.xlu0 %714 }
 0x600   :  { %v719_v49 = vsub.f32 %v711_v32, %v715_v48 }
 0x602   :  { %v721_v50 = vmul.f32 1.442695, %v719_v49 }
 0x604   :  { %4520 = vpow2.f32 %v721_v50 }
 0x60e   :  { %v4521_v51 = vpop.eup %4520 }
 0x60f   :  { %v718_v52 = vpop.xlane.xlu1 %717  ;;  %v725_v53 = vsel %vm190_vm2, %v4521_v51, 0.0 }
 0x610   :  { %726 = vadd.xlane.f32.xlu0 %v725_v53  ;;  %v720_v55 = vsub.f32 %v712_v45, %v718_v52 }
 0x612   :  { %v723_v56 = vmul.f32 1.442695, %v720_v55 }
 0x613   :  { %v812_v54 = vpop.permute.xlu1 %811 }
 0x614   :  { %4175 = vmatpush3.msra.mxu1 %v812_v54  ;;  %4522 = vpow2.f32 %v723_v56 }
 0x615   :  { %4184 = vmatprep.subr.mxu1 %v4624_v41 }
 0x617   :  { %v890_v1 = vpop.permute.xlu1 %889 }
 0x61b   :  { %v968_v5 = vpop.permute.xlu1 %967 }
 0x61e   :  { %v4523_v58 = vpop.eup %4522 }
 0x61f   :  { %v728_v59 = vsel %vm190_vm2, %v4523_v58, 0.0  ;;  %v966_v7 = vpop.permute.xlu1 %965 }
 0x626   :  { %735 = vrot.lane.b32.xlu0 %v4773_v46, %s4631_s0 }
 0x645   :  { %729 = vadd.xlane.f32.xlu0 %v728_v59 }
 0x65b   :  { %887 = vrot.lane.b32.xlu0 %v4773_v46, %s4633_s23 }
 0x69d   :  { %v727_v60 = vpop.xlane.xlu0 %726 }
 0x69e   :  { %4524 = vrcp.f32 %v727_v60 }
 0x6a1   :  { %v736_v62 = vpop.permute.xlu0 %735 }
 0x6a2   :  { %4170 = vmatpush3.msra.mxu0 %v736_v62 }
 0x6a3   :  { %4179 = vmatprep.subr.mxu0 %v4624_v41 }
 0x6a8   :  { %v4525_v63 = vpop.eup %4524 }
 0x6a9   :  { %v733_v0 = vmul.f32 %v4525_v63, %v4521_v51 }
 0x6ab   :  { %4172 = vmatmul.mubr.msk.f32.vlgmr.msra.gmra.mrb[4].mxu0 %vm190_vm2, %v733_v0 }
 0x6ac   :  { %4180 = vmatpush3.xpose.msk.msra.mxu0 %vm190_vm2, %v890_v1  ;;  %4181 = vmatprep.mubr.msk.f32.mxu0 %vm4625_vm1, %v4624_v41 }
 0x6ad   :  { %4189 = vmatprep.subr.mxu0 %v4624_v41 }
 0x6d2   :  { %v730_v2 = vpop.xlane.xlu0 %729 }
 0x6d3   :  { %4526 = vrcp.f32 %v730_v2 }
 0x6d6   :  { %v888_v3 = vpop.permute.xlu0 %887 }
 0x6d7   :  { %4182 = vmatmul.mubr.msk.f32.vlgmr.msra.gmra.mrb[6].mxu0 %vm190_vm2, %v888_v3 }
 0x6d8   :  { %4191 = vmatprep.mubr.msk.f32.mxu0 %vm4625_vm1, %v4624_v41 }
 0x6dd   :  { %v4527_v4 = vpop.eup %4526 }
 0x6de   :  { %v734_v6 = vmul.f32 %v4527_v4, %v4523_v58 }
 0x6e0   :  { %4177 = vmatmul.mubr.msk.f32.vlgmr.msra.gmra.mrb[10].mxu1 %vm190_vm2, %v734_v6 }
 0x6e1   :  { %4185 = vmatpush3.xpose.msk.msra.mxu1 %vm190_vm2, %v968_v5  ;;  %4186 = vmatprep.mubr.msk.f32.mxu1 %vm4625_vm1, %v4624_v41 }
 0x6e2   :  { %4194 = vmatprep.subr.mxu1 %v4624_v41 }
 0x6e4   :  { %4187 = vmatmul.mubr.msk.f32.vlgmr.msra.gmra.mrb[12].mxu1 %vm190_vm2, %v966_v7 }
 0x6e5   :  { %4196 = vmatprep.mubr.msk.f32.mxu1 %vm4625_vm1, %v4624_v41 }
 0x77e   :  { %v4876_v8 = vpop.f32.mrb[4].mxu0 }
 0x77f   :  { %v4173_v9 = vpop.f32.mrb[5].mxu0 }
 0x7aa   :  { %v961_v10 = vpop.f32.mrb[6].mxu0 }
 0x7ab   :  { %v1043_v11 = vmul.f32 0.35355338, %v961_v10  ;;  %v4183_v12 = vpop.f32.mrb[7].mxu0 }
 0x7ad   :  { %v1045_v13 = vadd.f32 %v1043_v11, %v4795_v57 }
 0x7af   :  { %v1047_v14 = vsel %vm190_vm2, %v1045_v13, -inf }
 0x7b0   :  { %1048 = vmax.xlane.f32.xlu0 %v1047_v14 }
 0x7b3   :  { %v4880_v15 = vpop.f32.mrb[10].mxu1 }
 0x7b4   :  { %v4178_v16 = vpop.f32.mrb[11].mxu1 }
 0x7b7   :  { %v1039_v17 = vpop.f32.mrb[12].mxu1 }
 0x7b8   :  { %v1044_v18 = vmul.f32 0.35355338, %v1039_v17  ;;  %v4188_v19 = vpop.f32.mrb[13].mxu1 }
 0x7ba   :  { %v1046_v20 = vadd.f32 %v1044_v18, %v4798_v61 }
 0x7bc   :  { %v1050_v21 = vsel %vm190_vm2, %v1046_v20, -inf }
 0x7bd   :  { %1051 = vmax.xlane.f32.xlu1 %v1050_v21 }
 0x7ce   :  { %1145 = vrot.lane.b32.xlu1 %v4771_v44, %s4634_s24 }
 0x7d2   :  { %1223 = vrot.lane.b32.xlu1 %v4773_v46, %s4635_s25 }
 0x7d6   :  { %1301 = vrot.lane.b32.xlu1 %v4771_v44, %s4635_s25 }
 0x7da   :  { %1299 = vrot.lane.b32.xlu1 %v4771_v44, %s4636_s26 }
 0x83d   :  { %v1049_v22 = vpop.xlane.xlu0 %1048 }
 0x83e   :  { %v1053_v23 = vsub.f32 %v1045_v13, %v1049_v22  ;;  %v1588_v22 = vld [vmem:[%s5338_s5 + $0x8] sm:$0xff] }
 0x840   :  { %v1055_v24 = vmul.f32 1.442695, %v1053_v23 }
 0x842   :  { %4528 = vpow2.f32 %v1055_v24  ;;  %v1589_v24 = vld [vmem:[%s5338_s5 + $0x10] sm:$0xff] }
 0x84a   :  { %v1052_v25 = vpop.xlane.xlu1 %1051 }
 0x84b   :  { %v1054_v31 = vsub.f32 %v1046_v20, %v1052_v25  ;;  %v1590_v25 = vld [vmem:[%s5338_s5 + $0x18] sm:$0xff] }
 0x84c   :  { %v4529_v26 = vpop.eup %4528 }
 0x84d   :  { %v1059_v27 = vsel %vm190_vm2, %v4529_v26, 0.0  ;;  %v1057_v32 = vmul.f32 1.442695, %v1054_v31 }
 0x84e   :  { %1060 = vadd.xlane.f32.xlu0 %v1059_v27  ;;  %v1146_v29 = vpop.permute.xlu1 %1145 }
 0x84f   :  { %4195 = vmatpush3.msra.mxu1 %v1146_v29  ;;  %4530 = vpow2.f32 %v1057_v32 }
 0x850   :  { %4204 = vmatprep.subr.mxu1 %v4624_v41 }
 0x852   :  { %v1224_v45 = vpop.permute.xlu1 %1223 }
 0x856   :  { %v1302_v50 = vpop.permute.xlu1 %1301 }
 0x859   :  { %v4531_v34 = vpop.eup %4530 }
 0x85a   :  { %v1062_v35 = vsel %vm190_vm2, %v4531_v34, 0.0  ;;  %v1300_v52 = vpop.permute.xlu1 %1299 }
 0x864   :  { %1069 = vrot.lane.b32.xlu0 %v4773_v46, %s4634_s24 }
 0x883   :  { %1063 = vadd.xlane.f32.xlu0 %v1062_v35 }
 0x899   :  { %1221 = vrot.lane.b32.xlu0 %v4773_v46, %s4636_s26 }
 0x8db   :  { %v1061_v37 = vpop.xlane.xlu0 %1060 }
 0x8dc   :  { %4532 = vrcp.f32 %v1061_v37 }
 0x8df   :  { %v1070_v39 = vpop.permute.xlu0 %1069 }
 0x8e0   :  { %4190 = vmatpush3.msra.mxu0 %v1070_v39 }
 0x8e1   :  { %4199 = vmatprep.subr.mxu0 %v4624_v41 }
 0x8e6   :  { %v4533_v42 = vpop.eup %4532 }
 0x8e7   :  { %v1067_v43 = vmul.f32 %v4533_v42, %v4529_v26  ;;  %v4415_v26 = vpack.c.bf16 %v1590_v25, %v1589_v24 }
 0x8e9   :  { %4192 = vmatmul.mubr.msk.f32.vlgmr.msra.gmra.mrb[8].mxu0 %vm190_vm2, %v1067_v43 }
 0x8ea   :  { %4200 = vmatpush3.xpose.msk.msra.mxu0 %vm190_vm2, %v1224_v45  ;;  %4201 = vmatprep.mubr.msk.f32.mxu0 %vm4625_vm1, %v4624_v41 }
 0x8eb   :  { %4209 = vmatprep.subr.mxu0 %v4624_v41 }
 0x910   :  { %v1064_v47 = vpop.xlane.xlu0 %1063 }
 0x911   :  { %4534 = vrcp.f32 %v1064_v47 }
 0x914   :  { %v1222_v48 = vpop.permute.xlu0 %1221 }
 0x915   :  { %4202 = vmatmul.mubr.msk.f32.vlgmr.msra.gmra.mrb[10].mxu0 %vm190_vm2, %v1222_v48 }
 0x916   :  { %4211 = vmatprep.mubr.msk.f32.mxu0 %vm4625_vm1, %v4624_v41 }
 0x91b   :  { %v4535_v49 = vpop.eup %4534 }
 0x91c   :  { %v1068_v51 = vmul.f32 %v4535_v49, %v4531_v34 }
 0x91e   :  { %4197 = vmatmul.mubr.msk.f32.vlgmr.msra.gmra.mrb[14].mxu1 %vm190_vm2, %v1068_v51 }
 0x91f   :  { %4205 = vmatpush3.xpose.msk.msra.mxu1 %vm190_vm2, %v1302_v50  ;;  %4206 = vmatprep.mubr.msk.f32.mxu1 %vm4625_vm1, %v4624_v41 }
 0x920   :  { %4214 = vmatprep.subr.mxu1 %v4624_v41 }
 0x922   :  { %4207 = vmatmul.mubr.msk.f32.vlgmr.msra.gmra.mrb[16].mxu1 %vm190_vm2, %v1300_v52 }
 0x923   :  { %4216 = vmatprep.mubr.msk.f32.mxu1 %vm4625_vm1, %v4624_v41 }
 0x9bc   :  { %v1141_v53 = vpop.f32.mrb[8].mxu0 }
 0x9bd   :  { %v4193_v54 = vpop.f32.mrb[9].mxu0 }
 0x9e8   :  { %v1295_v55 = vpop.f32.mrb[10].mxu0 }
 0x9e9   :  { %v1377_v56 = vmul.f32 0.35355338, %v1295_v55  ;;  %v4203_v58 = vpop.f32.mrb[11].mxu0 }
 0x9eb   :  { %v1379_v59 = vadd.f32 %v1377_v56, %v4795_v57 }
 0x9ed   :  { %v1381_v60 = vsel %vm190_vm2, %v1379_v59, -inf }
 0x9ee   :  { %1382 = vmax.xlane.f32.xlu0 %v1381_v60 }
 0x9f1   :  { %v1217_v62 = vpop.f32.mrb[14].mxu1 }
 0x9f2   :  { %v4198_v63 = vpop.f32.mrb[15].mxu1 }
 0x9f5   :  { %v1373_v0 = vpop.f32.mrb[16].mxu1 }
 0x9f6   :  { %v1378_v1 = vmul.f32 0.35355338, %v1373_v0  ;;  %v4208_v2 = vpop.f32.mrb[17].mxu1 }
 0x9f8   :  { %v1380_v3 = vadd.f32 %v1378_v1, %v4798_v61 }
 0x9fa   :  { %v1384_v4 = vsel %vm190_vm2, %v1380_v3, -inf }
 0x9fb   :  { %1385 = vmax.xlane.f32.xlu1 %v1384_v4 }
 0xa0c   :  { %1479 = vrot.lane.b32.xlu1 %v4771_v44, %s5353_s27 }
 0xa10   :  { %1557 = vrot.lane.b32.xlu1 %v4876_v8, %s5351_s28 }
 0xa14   :  { %1559 = vrot.lane.b32.xlu1 %v4880_v15, %s5351_s28 }
 0xa18   :  { %1567 = vrot.lane.b32.xlu1 %v1217_v62, %s5349_s29 }
 0xa7b   :  { %v1383_v5 = vpop.xlane.xlu0 %1382 }
 0xa7c   :  { %v1387_v6 = vsub.f32 %v1379_v59, %v1383_v5 }
 0xa7e   :  { %v1389_v7 = vmul.f32 1.442695, %v1387_v6  ;;  %v1721_v6 = vld [vmem:[%s5341_s8 + $0x8] sm:$0xff] }
 0xa80   :  { %4536 = vpow2.f32 %v1389_v7 }
 0xa88   :  { %v1386_v9 = vpop.xlane.xlu1 %1385 }
 0xa89   :  { %v1388_v10 = vsub.f32 %v1380_v3, %v1386_v9  ;;  %v1722_v9 = vld [vmem:[%s5341_s8 + $0x10] sm:$0xff] }
 0xa8a   :  { %v4537_v11 = vpop.eup %4536 }
 0xa8b   :  { %v1391_v12 = vmul.f32 1.442695, %v1388_v10  ;;  %v1393_v44 = vsel %vm190_vm2, %v4537_v11, 0.0  ;;  %v1723_v10 = vld [vmem:[%s5341_s8 + $0x18] sm:$0xff] }
 0xa8c   :  { %1394 = vadd.xlane.f32.xlu0 %v1393_v44  ;;  %v1480_v13 = vpop.permute.xlu1 %1479 }
 0xa8d   :  { %4538 = vpow2.f32 %v1391_v12  ;;  %4215 = vmatpush3.msra.mxu1 %v1480_v13 }
 0xa90   :  { %v1558_v34 = vpop.permute.xlu1 %1557 }
 0xa91   :  { %v1579_v39 = vsel %vm190_vm2, %v4837_v33, %v1558_v34  ;;  %v3930_v33 = vld [vmem:[%s5339_s6] ss:$0 sm:$0xff] }
 0xa94   :  { %v1560_v37 = vpop.permute.xlu1 %1559 }
 0xa95   :  { %v1580_v48 = vsel %vm190_vm2, %v4840_v36, %v1560_v37  ;;  %v1827_v37 = vld [vmem:[%s5343_s10 + $0x28] sm:$0xff] }
 0xa97   :  { %v4539_v8 = vpop.eup %4538 }
 0xa98   :  { %v1396_v14 = vsel %vm190_vm2, %v4539_v8, 0.0  ;;  %v1568_v47 = vpop.permute.xlu1 %1567 }
 0xa99   :  { %1397 = vadd.xlane.f32.xlu0 %v1396_v14  ;;  %v1583_v49 = vsel %vm1581_vm4, %v1580_v48, %v1568_v47  ;;  %v3933_v47 = vld [vmem:[%s5342_s9] ss:$0 sm:$0xff] }
 0xaaf   :  { %1403 = vrot.lane.b32.xlu0 %v4773_v46, %s5353_s27  ;;  %v1587_v46 = vld [vmem:[%s5338_s5] sm:$0xff] }
 0xab0   :  { %v4411_v23 = vpack.c.bf16 %v1588_v22, %v1587_v46 }
 0xab3   :  { %1565 = vrot.lane.b32.xlu0 %v1141_v53, %s5349_s29 }
 0xb19   :  { %v1395_v15 = vpop.xlane.xlu0 %1394 }
 0xb1a   :  { %4540 = vrcp.f32 %v1395_v15 }
 0xb24   :  { %v4541_v17 = vpop.eup %4540 }
 0xb25   :  { %v1401_v18 = vmul.f32 %v4541_v17, %v4537_v11  ;;  %v4423_v11 = vpack.c.bf16 %v1723_v10, %v1722_v9 }
 0xb26   :  { %v1398_v16 = vpop.xlane.xlu0 %1397 }
 0xb27   :  { %4542 = vrcp.f32 %v1398_v16  ;;  %v1679_v16 = vld [vmem:[%s5340_s7] sm:$0x3] }
 0xb28   :  { %v1711_v17 = vrot.slane %v1679_v16, %v4745_v28 }
 0xb2a   :  { %v1404_v19 = vpop.permute.xlu0 %1403 }
 0xb2b   :  { %4210 = vmatpush3.msra.mxu0 %v1404_v19 }
 0xb2c   :  { %4212 = vmatmul.mubr.msk.f32.vlgmr.msra.gmra.mrb[12].mxu0 %vm190_vm2, %v1401_v18  ;;  %4412 = vmatprep.subr.bf16.mxu0 %v4411_v23 }
 0xb2d   :  { %4414 = vmatpush3.bf16.msra.mxu0 %v4411_v23 }
 0xb2e   :  { %4416 = vmatprep.subr.bf16.mxu0 %v4415_v26  ;;  %v1566_v35 = vpop.permute.xlu0 %1565 }
 0xb2f   :  { %v1582_v42 = vsel %vm1581_vm4, %v1579_v39, %v1566_v35  ;;  %v1826_v35 = vld [vmem:[%s5343_s10 + $0x20] sm:$0xff] }
 0xb30   :  { %v4435_v39 = vpack.c.bf16 %v1827_v37, %v1826_v35 }
 0xb31   :  { %v4543_v20 = vpop.eup %4542  ;;  %4418 = vmatpush3.bf16.msra.mxu0 %v4415_v26  ;;  %v1822_v26 = vld [vmem:[%s5343_s10] sm:$0xff] }
 0xb32   :  { %v1402_v21 = vmul.f32 %v4543_v20, %v4539_v8  ;;  %v1717_v20 = vrot.slane %v1679_v16, %v4750_v30 }
 0xb34   :  { %4217 = vmatmul.mubr.msk.f32.vlgmr.msra.gmra.mrb[18].mxu1 %vm190_vm2, %v1402_v21 }
 0xbff   :  { %v1475_v27 = vpop.f32.mrb[12].mxu0 }
 0xc00   :  { %1573 = vrot.lane.b32.xlu0 %v1475_v27, %s5355_s30  ;;  %v4213_v29 = vpop.f32.mrb[13].mxu0  ;;  %v1823_v27 = vld [vmem:[%s5343_s10 + $0x8] sm:$0xff] }
 0xc01   :  { %v4427_v29 = vpack.c.bf16 %v1823_v27, %v1822_v26 }
 0xc03   :  { %4428 = vmatprep.subr.bf16.mxu0 %v4427_v29 }
 0xc07   :  { %v1551_v31 = vpop.f32.mrb[18].mxu1 }
 0xc08   :  { %1575 = vrot.lane.b32.xlu1 %v1551_v31, %s5355_s30  ;;  %v4218_v32 = vpop.f32.mrb[19].mxu1  ;;  %v1824_v31 = vld [vmem:[%s5343_s10 + $0x10] sm:$0xff] }
 0xc09   :  { %v1825_v32 = vld [vmem:[%s5343_s10 + $0x18] sm:$0xff] }
 0xc0a   :  { %v4431_v34 = vpack.c.bf16 %v1825_v32, %v1824_v31 }
 0xc72   :  { %v1574_v43 = vpop.permute.xlu0 %1573 }
 0xc73   :  { %v1585_v45 = vsel %vm1584_vm3, %v1582_v42, %v1574_v43  ;;  %v1828_v42 = vld [vmem:[%s5343_s10 + $0x30] sm:$0xff]  ;;  %v1829_v43 = vld [vmem:[%s5343_s10 + $0x38] sm:$0xff] }
 0xc74   :  { %4227 = vmatprep.mubr.msk.f32.mxu0 %vm54_vm0, %v1585_v45  ;;  %v4439_v45 = vpack.c.bf16 %v1829_v43, %v1828_v42  ;;  %v3944_v43 = vld [vmem:[%s5337_s4 + $0x1] ss:$0 sm:$0xff]  ;;  %s5357_s4 = smov 40  }
 0xc7a   :  { %v1576_v50 = vpop.permute.xlu1 %1575 }
 0xc7b   :  { %v1586_v51 = vsel %vm1584_vm3, %v1583_v49, %v1576_v50 }
 0xc7c   :  { %4228 = vmatmul.mubr.msk.f32.vlgmr.msra.gmra.mrb[14].mxu0 %vm54_vm0, %v1586_v51 }
 0xc7d   :  { %4430 = vmatpush3.bf16.msra.mxu0 %v4427_v29 }
 0xc7e   :  { %4432 = vmatprep.subr.bf16.mxu0 %v4431_v34 }
 0xc81   :  { %4434 = vmatpush3.bf16.msra.mxu0 %v4431_v34 }
 0xc82   :  { %4436 = vmatprep.subr.bf16.mxu0 %v4435_v39 }
 0xc85   :  { %4438 = vmatpush3.bf16.msra.mxu0 %v4435_v39 }
 0xc86   :  { %4440 = vmatprep.subr.bf16.mxu0 %v4439_v45 }
 0xc89   :  { %4442 = vmatpush3.bf16.msra.mxu0 %v4439_v45 }
 0xc8a   :  { %4281 = vmatprep.subr.mxu0 %v4624_v41 }
 0xd4f   :  { %v4229_v52 = vpop.f32.mrb[14].mxu0 }
 0xd50   :  { %v1676_v53 = vadd.f32 %v4229_v52, %v3930_v33  ;;  %v1670_v54 = vpop.f32.mrb[15].mxu0 }
 0xd51   :  { %v1671_v55 = vadd.f32 %v3930_v33, %v1670_v54 }
 0xd52   :  { %v1681_v56 = vadd.f32 %v1676_v53, %v4758_v40 }
 0xd53   :  { %v1680_v58 = vadd.f32 %v1671_v55, %v4754_v38  ;;  %v1720_v38 = vld [vmem:[%s5341_s8] sm:$0xff] }
 0xd54   :  { %v1685_v36 = vsel %vm54_vm0, %v1681_v56, 0.0  ;;  %v4419_v7 = vpack.c.bf16 %v1721_v6, %v1720_v38 }
 0xd55   :  { %1686 = vadd.xlane.f32.xlu1 %v1685_v36  ;;  %v1682_v59 = vsel %vm54_vm0, %v1680_v58, 0.0 }
 0xd56   :  { %1683 = vadd.xlane.f32.xlu0 %v1682_v59  ;;  %4420 = vmatprep.subr.bf16.mxu1 %v4419_v7 }
 0xd57   :  { %4422 = vmatpush3.bf16.msra.mxu1 %v4419_v7 }
 0xd58   :  { %4424 = vmatprep.subr.bf16.mxu1 %v4423_v11 }
 0xd5b   :  { %4426 = vmatpush3.bf16.msra.mxu1 %v4423_v11 }
 0xde2   :  { %v1687_v60 = vpop.xlane.xlu1 %1686 }
 0xde3   :  { %v1689_v62 = vmul.f32 0.03125, %v1687_v60  ;;  %v1684_v63 = vpop.xlane.xlu0 %1683 }
 0xde4   :  { %v1688_v0 = vmul.f32 0.03125, %v1684_v63 }
 0xde5   :  { %v1691_v1 = vsub.f32 %v1681_v56, %v1689_v62  ;;  %v3936_v62 = vld [vmem:[%s5344_s11] ss:$0 sm:$0xff] }
 0xde6   :  { %v1690_v2 = vsub.f32 %v1680_v58, %v1688_v0 }
 0xde7   :  { %v1693_v5 = vmul.f32 %v1691_v1, %v1691_v1 }
 0xde8   :  { %v1692_v3 = vmul.f32 %v1690_v2, %v1690_v2 }
 0xde9   :  { %v1697_v40 = vsel %vm54_vm0, %v1693_v5, 0.0 }
 0xdea   :  { %v1694_v4 = vsel %vm54_vm0, %v1692_v3, 0.0 }
 0xdeb   :  { %1695 = vadd.xlane.f32.xlu0 %v1694_v4 }
 0xdef   :  { %1698 = vadd.xlane.f32.xlu0 %v1697_v40 }
 0xe78   :  { %v1696_v12 = vpop.xlane.xlu0 %1695 }
 0xe79   :  { %v1700_v44 = vmul.f32 0.03125, %v1696_v12 }
 0xe7b   :  { %v1702_v13 = vadd.f32 1e-12, %v1700_v44 }
 0xe7c   :  { %v1699_v8 = vpop.xlane.xlu0 %1698 }
 0xe7d   :  { %4544 = vrsqrt.f32 %v1702_v13  ;;  %v1701_v14 = vmul.f32 0.03125, %v1699_v8 }
 0xe7f   :  { %v1703_v15 = vadd.f32 1e-12, %v1701_v14  ;;  %v3939_v14 = vld [vmem:[%s5336_s3 + $0x20] sm:$0xff] }
 0xe81   :  { %4546 = vrsqrt.f32 %v1703_v15  ;;  %v3940_v15 = vld [vmem:[%s5336_s3 + $0x28] sm:$0xff] }
 0xe82   :  { %v4443_v16 = vpack.c.bf16 %v3940_v15, %v3939_v14 }
 0xe84   :  { %4444 = vmatprep.subr.bf16.mxu1 %v4443_v16 }
 0xe87   :  { %v4545_v18 = vpop.eup %4544 }
 0xe88   :  { %v1706_v19 = vmul.f32 %v4545_v18, %v1690_v2  ;;  %v3942_v18 = vld [vmem:[%s5336_s3 + $0x38] sm:$0xff] }
 0xe8a   :  { %v1712_v21 = vmul.f32 %v1711_v17, %v1706_v19 }
 0xe8b   :  { %v4547_v46 = vpop.eup %4546 }
 0xe8c   :  { %v1707_v22 = vmul.f32 %v4547_v46, %v1691_v1  ;;  %v1718_v23 = vadd.f32 %v1717_v20, %v1712_v21 }
 0xe8e   :  { %v1713_v24 = vmul.f32 %v1711_v17, %v1707_v22  ;;  %4238 = vmatprep.mubr.msk.f32.mxu1 %vm54_vm0, %v1718_v23  ;;  %v3941_v17 = vld [vmem:[%s5336_s3 + $0x30] sm:$0xff] }
 0xe8f   :  { %v4447_v19 = vpack.c.bf16 %v3942_v18, %v3941_v17 }
 0xe90   :  { %v1719_v25 = vadd.f32 %v1717_v20, %v1713_v24 }
 0xe92   :  { %4239 = vmatmul.mubr.msk.f32.vlgmr.msra.gmra.mrb[20].mxu1 %vm54_vm0, %v1719_v25 }
 0xe93   :  { %4446 = vmatpush3.bf16.msra.mxu1 %v4443_v16 }
 0xe94   :  { %4448 = vmatprep.subr.bf16.mxu1 %v4447_v19 }
 0xe97   :  { %4450 = vmatpush3.bf16.msra.mxu1 %v4447_v19 }
 0xe98   :  { %4271 = vmatprep.subr.mxu1 %v4624_v41 }
 0xf65   :  { %v4240_v48 = vpop.f32.mrb[20].mxu1 }
 0xf66   :  { %v1809_v49 = vadd.f32 %v4240_v48, %v3933_v47  ;;  %v1803_v50 = vpop.f32.mrb[21].mxu1 }
 0xf67   :  { %v1804_v51 = vadd.f32 %v3933_v47, %v1803_v50 }
 0xf68   :  { %v1815_v33 = vmul.f32 0.70710677, %v1809_v49  ;;  %v1813_v36 = vmul.f32 0.5, %v1809_v49 }
 0xf69   :  { %v1814_v52 = vmul.f32 0.70710677, %v1804_v51  ;;  %v1812_v56 = vmul.f32 0.5, %v1804_v51 }
 0xf6a   :  { %4548 = verf.f32 %v1815_v33 }
 0xf6b   :  { %4550 = verf.f32 %v1814_v52 }
 0xf74   :  { %v4549_v53 = vpop.eup %4548 }
 0xf75   :  { %v4551_v54 = vpop.eup %4550  ;;  %v1819_v55 = vadd.f32 1.0, %v4549_v53 }
 0xf76   :  { %v1818_v58 = vadd.f32 1.0, %v4551_v54 }
 0xf77   :  { %v1821_v60 = vmul.f32 %v1819_v55, %v1813_v36 }
 0xf78   :  { %v1820_v59 = vmul.f32 %v1818_v58, %v1812_v56 }
 0xf7a   :  { %4257 = vmatprep.mubr.msk.f32.mxu0 %vm1837_vm5, %v1820_v59 }
 0xf7b   :  { %4258 = vmatmul.mubr.msk.f32.vlgmr.msra.gmra.mrb[16].mxu0 %vm1837_vm5, %v1821_v60 }
 0xf7c   :  { %4283 = vmatprep.mubr.msk.f32.mxu0 %vm4625_vm1, %v4624_v41 }
0x104e   :  { %v4259_v63 = vpop.f32.mrb[16].mxu0 }
0x104f   :  { %v1916_v0 = vadd.f32 %v4259_v63, %v3936_v62  ;;  %v1910_v1 = vpop.f32.mrb[17].mxu0 }
0x1050   :  { %v1911_v2 = vadd.f32 %v3936_v62, %v1910_v1 }
0x1051   :  { %v1921_v3 = vadd.f32 %v1916_v0, %v1719_v25  ;;  %v1919_v25 = vld [vmem:[%s5345_s12] sm:$0x3] }
0x1052   :  { %v1920_v4 = vadd.f32 %v1911_v2, %v1718_v23  ;;  %v1951_v26 = vrot.slane %v1919_v25, %v4745_v28  ;;  %v1957_v34 = vrot.slane %v1919_v25, %v4750_v30 }
0x1053   :  { %v1925_v5 = vsel %vm54_vm0, %v1921_v3, 0.0 }
0x1054   :  { %1926 = vadd.xlane.f32.xlu1 %v1925_v5  ;;  %v1922_v40 = vsel %vm54_vm0, %v1920_v4, 0.0 }
0x1055   :  { %1923 = vadd.xlane.f32.xlu0 %v1922_v40 }
0x10e1   :  { %v1927_v38 = vpop.xlane.xlu1 %1926 }
0x10e2   :  { %v1929_v6 = vmul.f32 0.03125, %v1927_v38  ;;  %v1924_v7 = vpop.xlane.xlu0 %1923 }
0x10e3   :  { %v1928_v9 = vmul.f32 0.03125, %v1924_v7 }
0x10e4   :  { %v1931_v10 = vsub.f32 %v1921_v3, %v1929_v6 }
0x10e5   :  { %v1930_v11 = vsub.f32 %v1920_v4, %v1928_v9 }
0x10e6   :  { %v1933_v12 = vmul.f32 %v1931_v10, %v1931_v10 }
0x10e7   :  { %v1932_v44 = vmul.f32 %v1930_v11, %v1930_v11 }
0x10e8   :  { %v1937_v13 = vsel %vm54_vm0, %v1933_v12, 0.0 }
0x10e9   :  { %1938 = vadd.xlane.f32.xlu1 %v1937_v13  ;;  %v1934_v8 = vsel %vm54_vm0, %v1932_v44, 0.0 }
0x10ea   :  { %1935 = vadd.xlane.f32.xlu0 %v1934_v8 }
0x1176   :  { %v1939_v20 = vpop.xlane.xlu1 %1938 }
0x1177   :  { %v1941_v21 = vmul.f32 0.03125, %v1939_v20  ;;  %v1936_v46 = vpop.xlane.xlu0 %1935 }
0x1178   :  { %v1940_v22 = vmul.f32 0.03125, %v1936_v46 }
0x1179   :  { %v1943_v23 = vadd.f32 1e-12, %v1941_v21 }
0x117a   :  { %v1942_v24 = vadd.f32 1e-12, %v1940_v22 }
0x117b   :  { %4552 = vrsqrt.f32 %v1943_v23 }
0x117c   :  { %4554 = vrsqrt.f32 %v1942_v24 }
0x1185   :  { %v4553_v27 = vpop.eup %4552 }
0x1186   :  { %v4555_v29 = vpop.eup %4554  ;;  %v1947_v31 = vmul.f32 %v4553_v27, %v1931_v10 }
0x1187   :  { %v1946_v32 = vmul.f32 %v4555_v29, %v1930_v11 }
0x1188   :  { %v1953_v35 = vmul.f32 %v1951_v26, %v1947_v31 }
0x1189   :  { %v1952_v37 = vmul.f32 %v1951_v26, %v1946_v32 }
0x118a   :  { %v5045_v42 = vadd.f32 %v1957_v34, %v1953_v35 }
0x118b   :  { %v5043_v39 = vadd.f32 %v1957_v34, %v1952_v37 }
0x118d   :  { %4268 = vmatprep.mubr.msk.f32.mxu1 %vm54_vm0, %v5043_v39 }
0x118e   :  { %4269 = vmatmul.mubr.msk.f32.vlgmr.msra.gmra.mrb[22].mxu1 %vm54_vm0, %v5045_v42 }
0x118f   :  { %4273 = vmatprep.mubr.msk.f32.mxu1 %vm4625_vm1, %v4624_v41 }
0x1261   :  { %v4270_v45 = vpop.f32.mrb[22].mxu1 }
0x1262   :  { %v5056_v47 = vadd.f32 %v4270_v45, %v3944_v43  ;;  %v2045_v48 = vpop.f32.mrb[23].mxu1 }
0x1263   :  { %v5058_v49 = vadd.f32 %v3944_v43, %v2045_v48 }
0x1264   :  { %2132 = vrot.lane.b32.xlu1 %v5056_v47, %s4626_s17 }
0x1265   :  { %2055 = vrot.lane.b32.xlu0 %v5058_v49, %s4626_s17  ;;  %s5358_s17 = smov 8  }
0x12d6   :  { %v2133_v51 = vpop.permute.xlu1 %2132 }
0x12d7   :  { %v2056_v50 = vpop.permute.xlu0 %2055 }
0x12d8   :  { %4272 = vmatpush3.xpose.msk.msra.mxu1 %vm190_vm2, %v2056_v50 }
0x12d9   :  { %4276 = vmatprep.subr.mxu1 %v4624_v41 }
0x12db   :  { %4274 = vmatmul.mubr.msk.f32.vlgmr.msra.gmra.mrb[24].mxu1 %vm190_vm2, %v5058_v49 }
0x12dc   :  { %4277 = vmatpush3.xpose.msk.msra.mxu1 %vm190_vm2, %v2133_v51  ;;  %4278 = vmatprep.mubr.msk.f32.mxu1 %vm4625_vm1, %v4624_v41 }
0x12dd   :  { %4286 = vmatprep.subr.mxu1 %v4624_v41 }
0x12df   :  { %4279 = vmatmul.mubr.msk.f32.vlgmr.msra.gmra.mrb[26].mxu1 %vm190_vm2, %v5056_v47 }
0x12e0   :  { %4288 = vmatprep.mubr.msk.f32.mxu1 %vm4625_vm1, %v4624_v41 }
0x13ae   :  { %v2127_v33 = vpop.f32.mrb[24].mxu1 }
0x13af   :  { %v2208_v52 = vmul.f32 0.35355338, %v2127_v33  ;;  %v4275_v53 = vpop.f32.mrb[25].mxu1 }
0x13b1   :  { %v2210_v54 = vadd.f32 %v2208_v52, %v4795_v57 }
0x13b2   :  { %v2204_v55 = vpop.f32.mrb[26].mxu1 }
0x13b3   :  { %v2209_v56 = vmul.f32 0.35355338, %v2204_v55  ;;  %v4280_v58 = vpop.f32.mrb[27].mxu1  ;;  %v2212_v36 = vsel %vm190_vm2, %v2210_v54, -inf }
0x13b4   :  { %2213 = vmax.xlane.f32.xlu1 %v2212_v36 }
0x13b5   :  { %v2211_v59 = vadd.f32 %v2209_v56, %v4798_v61 }
0x13b7   :  { %v2215_v60 = vsel %vm190_vm2, %v2211_v59, -inf }
0x13b8   :  { %2216 = vmax.xlane.f32.xlu0 %v2215_v60 }
0x13c5   :  { %2310 = vrot.lane.b32.xlu1 %v5056_v47, %s4628_s1 }
0x13c9   :  { %2388 = vrot.lane.b32.xlu1 %v5058_v49, %s4629_s20 }
0x13cd   :  { %2466 = vrot.lane.b32.xlu1 %v5056_v47, %s4629_s20 }
0x13ce   :  { %2234 = vrot.lane.b32.xlu0 %v5058_v49, %s4628_s1  ;;  %s5359_s1 = smov 16  }
0x1441   :  { %v2214_v62 = vpop.xlane.xlu1 %2213 }
0x1442   :  { %v2218_v63 = vsub.f32 %v2210_v54, %v2214_v62 }
0x1444   :  { %v2220_v0 = vmul.f32 1.442695, %v2218_v63 }
0x1445   :  { %v2311_v1 = vpop.permute.xlu1 %2310  ;;  %v2217_v2 = vpop.xlane.xlu0 %2216 }
0x1446   :  { %4556 = vpow2.f32 %v2220_v0  ;;  %v2219_v3 = vsub.f32 %v2211_v59, %v2217_v2  ;;  %4287 = vmatpush3.msra.mxu1 %v2311_v1 }
0x1447   :  { %4296 = vmatprep.subr.mxu1 %v4624_v41 }
0x1448   :  { %v2222_v4 = vmul.f32 1.442695, %v2219_v3 }
0x1449   :  { %v2235_v5 = vpop.permute.xlu0 %2234  ;;  %v2389_v9 = vpop.permute.xlu1 %2388 }
0x144a   :  { %4558 = vpow2.f32 %v2222_v4  ;;  %4282 = vmatpush3.msra.mxu0 %v2235_v5 }
0x144b   :  { %4291 = vmatprep.subr.mxu0 %v4624_v41 }
0x144d   :  { %v2467_v10 = vpop.permute.xlu1 %2466 }
0x1450   :  { %v4557_v40 = vpop.eup %4556 }
0x1451   :  { %v2224_v38 = vsel %vm190_vm2, %v4557_v40, 0.0 }
0x1452   :  { %2225 = vadd.xlane.f32.xlu0 %v2224_v38 }
0x1454   :  { %v4559_v6 = vpop.eup %4558 }
0x1455   :  { %v2227_v7 = vsel %vm190_vm2, %v4559_v6, 0.0 }
0x1456   :  { %2228 = vadd.xlane.f32.xlu1 %v2227_v7 }
0x1467   :  { %2464 = vrot.lane.b32.xlu1 %v5056_v47, %s4630_s21 }
0x1468   :  { %2386 = vrot.lane.b32.xlu0 %v5058_v49, %s4630_s21 }
0x14df   :  { %v2226_v11 = vpop.xlane.xlu0 %2225 }
0x14e0   :  { %4560 = vrcp.f32 %v2226_v11 }
0x14e3   :  { %v2229_v12 = vpop.xlane.xlu1 %2228  ;;  %v2387_v15 = vpop.permute.xlu0 %2386 }
0x14e4   :  { %4562 = vrcp.f32 %v2229_v12 }
0x14e7   :  { %v2465_v16 = vpop.permute.xlu1 %2464 }
0x14ea   :  { %v4561_v44 = vpop.eup %4560 }
0x14eb   :  { %v2232_v13 = vmul.f32 %v4561_v44, %v4557_v40 }
0x14ed   :  { %4284 = vmatmul.mubr.msk.f32.vlgmr.msra.gmra.mrb[18].mxu0 %vm190_vm2, %v2232_v13 }
0x14ee   :  { %v4563_v8 = vpop.eup %4562  ;;  %4292 = vmatpush3.xpose.msk.msra.mxu0 %vm190_vm2, %v2389_v9  ;;  %4293 = vmatprep.mubr.msk.f32.mxu0 %vm4625_vm1, %v4624_v41 }
0x14ef   :  { %v2233_v14 = vmul.f32 %v4563_v8, %v4559_v6  ;;  %4301 = vmatprep.subr.mxu0 %v4624_v41 }
0x14f1   :  { %4289 = vmatmul.mubr.msk.f32.vlgmr.msra.gmra.mrb[28].mxu1 %vm190_vm2, %v2233_v14  ;;  %4294 = vmatmul.mubr.msk.f32.vlgmr.msra.gmra.mrb[20].mxu0 %vm190_vm2, %v2387_v15 }
0x14f2   :  { %4297 = vmatpush3.xpose.msk.msra.mxu1 %vm190_vm2, %v2467_v10  ;;  %4298 = vmatprep.mubr.msk.f32.mxu1 %vm4625_vm1, %v4624_v41 }
0x14f3   :  { %4306 = vmatprep.subr.mxu1 %v4624_v41  ;;  %4303 = vmatprep.mubr.msk.f32.mxu0 %vm4625_vm1, %v4624_v41 }
0x14f5   :  { %4299 = vmatmul.mubr.msk.f32.vlgmr.msra.gmra.mrb[30].mxu1 %vm190_vm2, %v2465_v16 }
0x14f6   :  { %4308 = vmatprep.mubr.msk.f32.mxu1 %vm4625_vm1, %v4624_v41 }
0x15c0   :  { %v5112_v17 = vpop.f32.mrb[18].mxu0 }
0x15c1   :  { %v4285_v18 = vpop.f32.mrb[19].mxu0 }
0x15c4   :  { %v5114_v19 = vpop.f32.mrb[28].mxu1  ;;  %v2460_v20 = vpop.f32.mrb[20].mxu0 }
0x15c5   :  { %v2542_v21 = vmul.f32 0.35355338, %v2460_v20  ;;  %v4290_v46 = vpop.f32.mrb[29].mxu1  ;;  %v4295_v22 = vpop.f32.mrb[21].mxu0 }
0x15c7   :  { %v2544_v23 = vadd.f32 %v2542_v21, %v4795_v57 }
0x15c8   :  { %v2538_v24 = vpop.f32.mrb[30].mxu1 }
0x15c9   :  { %v2543_v25 = vmul.f32 0.35355338, %v2538_v24  ;;  %v4300_v26 = vpop.f32.mrb[31].mxu1  ;;  %v2546_v27 = vsel %vm190_vm2, %v2544_v23, -inf }
0x15ca   :  { %2547 = vmax.xlane.f32.xlu0 %v2546_v27 }
0x15cb   :  { %v2545_v29 = vadd.f32 %v2543_v25, %v4798_v61 }
0x15cd   :  { %v2549_v31 = vsel %vm190_vm2, %v2545_v29, -inf }
0x15ce   :  { %2550 = vmax.xlane.f32.xlu1 %v2549_v31 }
0x15df   :  { %2644 = vrot.lane.b32.xlu1 %v5056_v47, %s4631_s0 }
0x15e0   :  { %2568 = vrot.lane.b32.xlu0 %v5058_v49, %s4631_s0 }
0x15e3   :  { %2722 = vrot.lane.b32.xlu1 %v5058_v49, %s4632_s22 }
0x15e7   :  { %2800 = vrot.lane.b32.xlu1 %v5056_v47, %s4632_s22 }
0x15eb   :  { %2798 = vrot.lane.b32.xlu1 %v5056_v47, %s4633_s23 }
0x1657   :  { %v2548_v32 = vpop.xlane.xlu0 %2547 }
0x1658   :  { %v2552_v34 = vsub.f32 %v2544_v23, %v2548_v32 }
0x165a   :  { %v2554_v35 = vmul.f32 1.442695, %v2552_v34 }
0x165b   :  { %v2569_v37 = vpop.permute.xlu0 %2568  ;;  %v2551_v43 = vpop.xlane.xlu1 %2550 }
0x165c   :  { %4564 = vpow2.f32 %v2554_v35  ;;  %v2553_v45 = vsub.f32 %v2545_v29, %v2551_v43  ;;  %4302 = vmatpush3.msra.mxu0 %v2569_v37 }
0x165d   :  { %4311 = vmatprep.subr.mxu0 %v4624_v41 }
0x165e   :  { %v2556_v48 = vmul.f32 1.442695, %v2553_v45 }
0x165f   :  { %v2645_v50 = vpop.permute.xlu1 %2644 }
0x1660   :  { %4566 = vpow2.f32 %v2556_v48  ;;  %4307 = vmatpush3.msra.mxu1 %v2645_v50 }
0x1661   :  { %4316 = vmatprep.subr.mxu1 %v4624_v41 }
0x1663   :  { %v2723_v56 = vpop.permute.xlu1 %2722 }
0x1666   :  { %v4565_v51 = vpop.eup %4564 }
0x1667   :  { %v2558_v33 = vsel %vm190_vm2, %v4565_v51, 0.0  ;;  %v2801_v60 = vpop.permute.xlu1 %2800 }
0x1668   :  { %2559 = vadd.xlane.f32.xlu0 %v2558_v33 }
0x166a   :  { %v4567_v52 = vpop.eup %4566 }
0x166b   :  { %v2561_v53 = vsel %vm190_vm2, %v4567_v52, 0.0  ;;  %v2799_v0 = vpop.permute.xlu1 %2798 }
0x166c   :  { %2562 = vadd.xlane.f32.xlu0 %v2561_v53 }
0x1682   :  { %2720 = vrot.lane.b32.xlu0 %v5058_v49, %s4633_s23 }
0x16f5   :  { %v2560_v54 = vpop.xlane.xlu0 %2559 }
0x16f6   :  { %4568 = vrcp.f32 %v2560_v54 }
0x16f9   :  { %v2563_v55 = vpop.xlane.xlu0 %2562 }
0x16fa   :  { %4570 = vrcp.f32 %v2563_v55 }
0x16fd   :  { %v2721_v63 = vpop.permute.xlu0 %2720 }
0x1700   :  { %v4569_v58 = vpop.eup %4568 }
0x1701   :  { %v2566_v36 = vmul.f32 %v4569_v58, %v4565_v51 }
0x1703   :  { %4304 = vmatmul.mubr.msk.f32.vlgmr.msra.gmra.mrb[22].mxu0 %vm190_vm2, %v2566_v36 }
0x1704   :  { %v4571_v59 = vpop.eup %4570  ;;  %4312 = vmatpush3.xpose.msk.msra.mxu0 %vm190_vm2, %v2723_v56  ;;  %4313 = vmatprep.mubr.msk.f32.mxu0 %vm4625_vm1, %v4624_v41 }
0x1705   :  { %v2567_v62 = vmul.f32 %v4571_v59, %v4567_v52  ;;  %4321 = vmatprep.subr.mxu0 %v4624_v41 }
0x1707   :  { %4309 = vmatmul.mubr.msk.f32.vlgmr.msra.gmra.mrb[32].mxu1 %vm190_vm2, %v2567_v62  ;;  %4314 = vmatmul.mubr.msk.f32.vlgmr.msra.gmra.mrb[24].mxu0 %vm190_vm2, %v2721_v63 }
0x1708   :  { %4317 = vmatpush3.xpose.msk.msra.mxu1 %vm190_vm2, %v2801_v60  ;;  %4318 = vmatprep.mubr.msk.f32.mxu1 %vm4625_vm1, %v4624_v41 }
0x1709   :  { %4326 = vmatprep.subr.mxu1 %v4624_v41  ;;  %4323 = vmatprep.mubr.msk.f32.mxu0 %vm4625_vm1, %v4624_v41 }
0x170b   :  { %4319 = vmatmul.mubr.msk.f32.vlgmr.msra.gmra.mrb[34].mxu1 %vm190_vm2, %v2799_v0 }
0x170c   :  { %4328 = vmatprep.mubr.msk.f32.mxu1 %vm4625_vm1, %v4624_v41 }
0x17d6   :  { %v5152_v1 = vpop.f32.mrb[22].mxu0 }
0x17d7   :  { %v4305_v2 = vpop.f32.mrb[23].mxu0 }
0x17da   :  { %v5154_v3 = vpop.f32.mrb[32].mxu1  ;;  %v2794_v4 = vpop.f32.mrb[24].mxu0 }
0x17db   :  { %v2876_v5 = vmul.f32 0.35355338, %v2794_v4  ;;  %v4310_v40 = vpop.f32.mrb[33].mxu1  ;;  %v4315_v38 = vpop.f32.mrb[25].mxu0 }
0x17dd   :  { %v2878_v6 = vadd.f32 %v2876_v5, %v4795_v57 }
0x17de   :  { %v2872_v7 = vpop.f32.mrb[34].mxu1 }
0x17df   :  { %v2877_v9 = vmul.f32 0.35355338, %v2872_v7  ;;  %v4320_v10 = vpop.f32.mrb[35].mxu1  ;;  %v2880_v11 = vsel %vm190_vm2, %v2878_v6, -inf }
0x17e0   :  { %2881 = vmax.xlane.f32.xlu0 %v2880_v11 }
0x17e1   :  { %v2879_v12 = vadd.f32 %v2877_v9, %v4798_v61 }
0x17e3   :  { %v2883_v44 = vsel %vm190_vm2, %v2879_v12, -inf }
0x17e4   :  { %2884 = vmax.xlane.f32.xlu1 %v2883_v44 }
0x17f5   :  { %2978 = vrot.lane.b32.xlu1 %v5056_v47, %s4634_s24 }
0x17f6   :  { %2902 = vrot.lane.b32.xlu0 %v5058_v49, %s4634_s24 }
0x17f9   :  { %3056 = vrot.lane.b32.xlu1 %v5058_v49, %s4635_s25 }
0x17fd   :  { %3134 = vrot.lane.b32.xlu1 %v5056_v47, %s4635_s25 }
0x1801   :  { %3132 = vrot.lane.b32.xlu1 %v5056_v47, %s4636_s26 }
0x186d   :  { %v2882_v13 = vpop.xlane.xlu0 %2881 }
0x186e   :  { %v2886_v8 = vsub.f32 %v2878_v6, %v2882_v13  ;;  %v3973_v13 = vld [vmem:[%s5338_s5 + $0x30] sm:$0xff] }
0x1870   :  { %v2888_v14 = vmul.f32 1.442695, %v2886_v8  ;;  %v3974_v8 = vld [vmem:[%s5338_s5 + $0x38] sm:$0xff] }
0x1871   :  { %v2903_v15 = vpop.permute.xlu0 %2902  ;;  %v2885_v16 = vpop.xlane.xlu1 %2884 }
0x1872   :  { %4572 = vpow2.f32 %v2888_v14  ;;  %v2887_v18 = vsub.f32 %v2879_v12, %v2885_v16  ;;  %4322 = vmatpush3.msra.mxu0 %v2903_v15  ;;  %v3972_v12 = vld [vmem:[%s5338_s5 + $0x28] sm:$0xff]  ;;  %v4455_v14 = vpack.c.bf16 %v3974_v8, %v3973_v13  ;;  %v3988_v13 = vld [vmem:[%s5343_s10 + $0x40] sm:$0xff] }
0x1873   :  { %4331 = vmatprep.subr.mxu0 %v4624_v41  ;;  %v3989_v8 = vld [vmem:[%s5343_s10 + $0x48] sm:$0xff] }
0x1874   :  { %v2890_v20 = vmul.f32 1.442695, %v2887_v18 }
0x1875   :  { %v2979_v21 = vpop.permute.xlu1 %2978 }
0x1876   :  { %4574 = vpow2.f32 %v2890_v20  ;;  %4327 = vmatpush3.msra.mxu1 %v2979_v21 }
0x1877   :  { %4336 = vmatprep.subr.mxu1 %v4624_v41 }
0x1879   :  { %v3057_v27 = vpop.permute.xlu1 %3056 }
0x187c   :  { %v4573_v46 = vpop.eup %4572 }
0x187d   :  { %v2892_v22 = vsel %vm190_vm2, %v4573_v46, 0.0  ;;  %v3135_v34 = vpop.permute.xlu1 %3134 }
0x187e   :  { %2893 = vadd.xlane.f32.xlu0 %v2892_v22 }
0x1880   :  { %v4575_v23 = vpop.eup %4574 }
0x1881   :  { %v2895_v24 = vsel %vm190_vm2, %v4575_v23, 0.0  ;;  %v3133_v43 = vpop.permute.xlu1 %3132 }
0x1882   :  { %2896 = vadd.xlane.f32.xlu0 %v2895_v24 }
0x1898   :  { %3054 = vrot.lane.b32.xlu0 %v5058_v49, %s4636_s26 }
0x190b   :  { %v2894_v25 = vpop.xlane.xlu0 %2893 }
0x190c   :  { %4576 = vrcp.f32 %v2894_v25 }
0x190f   :  { %v2897_v26 = vpop.xlane.xlu0 %2896 }
0x1910   :  { %4578 = vrcp.f32 %v2897_v26 }
0x1913   :  { %v3055_v37 = vpop.permute.xlu0 %3054 }
0x1916   :  { %v4577_v29 = vpop.eup %4576 }
0x1917   :  { %v2900_v31 = vmul.f32 %v4577_v29, %v4573_v46 }
0x1919   :  { %4324 = vmatmul.mubr.msk.f32.vlgmr.msra.gmra.mrb[26].mxu0 %vm190_vm2, %v2900_v31 }
0x191a   :  { %v4579_v32 = vpop.eup %4578  ;;  %4332 = vmatpush3.xpose.msk.msra.mxu0 %vm190_vm2, %v3057_v27  ;;  %4333 = vmatprep.mubr.msk.f32.mxu0 %vm4625_vm1, %v4624_v41 }
0x191b   :  { %v2901_v35 = vmul.f32 %v4579_v32, %v4575_v23  ;;  %4341 = vmatprep.subr.mxu0 %v4624_v41 }
0x191d   :  { %4329 = vmatmul.mubr.msk.f32.vlgmr.msra.gmra.mrb[36].mxu1 %vm190_vm2, %v2901_v35  ;;  %4334 = vmatmul.mubr.msk.f32.vlgmr.msra.gmra.mrb[28].mxu0 %vm190_vm2, %v3055_v37 }
0x191e   :  { %4337 = vmatpush3.xpose.msk.msra.mxu1 %vm190_vm2, %v3135_v34  ;;  %4338 = vmatprep.mubr.msk.f32.mxu1 %vm4625_vm1, %v4624_v41 }
0x191f   :  { %4346 = vmatprep.subr.mxu1 %v4624_v41  ;;  %4343 = vmatprep.mubr.msk.f32.mxu0 %vm4625_vm1, %v4624_v41 }
0x1921   :  { %4339 = vmatmul.mubr.msk.f32.vlgmr.msra.gmra.mrb[38].mxu1 %vm190_vm2, %v3133_v43 }
0x1922   :  { %4348 = vmatprep.mubr.msk.f32.mxu1 %vm4625_vm1, %v4624_v41 }
0x19ec   :  { %v2974_v45 = vpop.f32.mrb[26].mxu0 }
0x19ed   :  { %v4325_v48 = vpop.f32.mrb[27].mxu0 }
0x19f0   :  { %v3050_v50 = vpop.f32.mrb[36].mxu1  ;;  %v3128_v51 = vpop.f32.mrb[28].mxu0 }
0x19f1   :  { %v3210_v33 = vmul.f32 0.35355338, %v3128_v51  ;;  %v4330_v52 = vpop.f32.mrb[37].mxu1  ;;  %v4335_v53 = vpop.f32.mrb[29].mxu0 }
0x19f3   :  { %v3212_v54 = vadd.f32 %v3210_v33, %v4795_v57 }
0x19f4   :  { %v3206_v55 = vpop.f32.mrb[38].mxu1 }
0x19f5   :  { %v3211_v56 = vmul.f32 0.35355338, %v3206_v55  ;;  %v4340_v58 = vpop.f32.mrb[39].mxu1  ;;  %v3214_v36 = vsel %vm190_vm2, %v3212_v54, -inf }
0x19f6   :  { %3215 = vmax.xlane.f32.xlu0 %v3214_v36 }
0x19f7   :  { %v3213_v59 = vadd.f32 %v3211_v56, %v4798_v61 }
0x19f9   :  { %v3217_v60 = vsel %vm190_vm2, %v3213_v59, -inf }
0x19fa   :  { %3218 = vmax.xlane.f32.xlu1 %v3217_v60  ;;  %v3981_v60 = vld [vmem:[%s5341_s8 + $0x28] sm:$0xff] }
0x1a0b   :  { %3312 = vrot.lane.b32.xlu1 %v5056_v47, %s5357_s4 }
0x1a0f   :  { %3390 = vrot.lane.b32.xlu1 %v5152_v1, %s5358_s17 }
0x1a13   :  { %3392 = vrot.lane.b32.xlu1 %v5154_v3, %s5358_s17 }
0x1a17   :  { %3400 = vrot.lane.b32.xlu1 %v3050_v50, %s5359_s1 }
0x1a83   :  { %v3216_v57 = vpop.xlane.xlu0 %3215 }
0x1a84   :  { %v3220_v62 = vsub.f32 %v3212_v54, %v3216_v57 }
0x1a86   :  { %v3222_v63 = vmul.f32 1.442695, %v3220_v62  ;;  %v3982_v62 = vld [vmem:[%s5341_s8 + $0x30] sm:$0xff] }
0x1a87   :  { %v3219_v0 = vpop.xlane.xlu1 %3218 }
0x1a88   :  { %4580 = vpow2.f32 %v3222_v63  ;;  %v3221_v61 = vsub.f32 %v3213_v59, %v3219_v0  ;;  %v3983_v63 = vld [vmem:[%s5341_s8 + $0x38] sm:$0xff] }
0x1a89   :  { %v4463_v0 = vpack.c.bf16 %v3983_v63, %v3982_v62 }
0x1a8a   :  { %v3224_v2 = vmul.f32 1.442695, %v3221_v61 }
0x1a8b   :  { %v3313_v4 = vpop.permute.xlu1 %3312 }
0x1a8c   :  { %4582 = vpow2.f32 %v3224_v2  ;;  %4347 = vmatpush3.msra.mxu1 %v3313_v4 }
0x1a8f   :  { %v3391_v21 = vpop.permute.xlu1 %3390 }
0x1a90   :  { %v3412_v23 = vsel %vm190_vm2, %v5112_v17, %v3391_v21  ;;  %v3976_v17 = vld [vmem:[%s5339_s6 + $0x1] ss:$0 sm:$0xff] }
0x1a92   :  { %v4581_v5 = vpop.eup %4580 }
0x1a93   :  { %v3226_v47 = vsel %vm190_vm2, %v4581_v5, 0.0  ;;  %v3393_v46 = vpop.permute.xlu1 %3392 }
0x1a94   :  { %3227 = vadd.xlane.f32.xlu0 %v3226_v47  ;;  %v3413_v29 = vsel %vm190_vm2, %v5114_v19, %v3393_v46  ;;  %v3994_v46 = vld [vmem:[%s5343_s10 + $0x70] sm:$0xff] }
0x1a96   :  { %v4583_v1 = vpop.eup %4582 }
0x1a97   :  { %v3229_v40 = vsel %vm190_vm2, %v4583_v1, 0.0  ;;  %v3401_v24 = vpop.permute.xlu1 %3400 }
0x1a98   :  { %3230 = vadd.xlane.f32.xlu0 %v3229_v40  ;;  %v3415_v31 = vsel %vm1581_vm4, %v3413_v29, %v3401_v24  ;;  %v3979_v40 = vld [vmem:[%s5340_s7 + $0x2] sm:$0x3]  ;;  %v3985_v24 = vld [vmem:[%s5342_s9 + $0x1] ss:$0 sm:$0xff] }
0x1aae   :  { %3236 = vrot.lane.b32.xlu0 %v5058_v49, %s5357_s4  ;;  %v3971_v49 = vld [vmem:[%s5338_s5 + $0x20] sm:$0xff] }
0x1aaf   :  { %v4451_v44 = vpack.c.bf16 %v3972_v12, %v3971_v49 }
0x1ab2   :  { %3398 = vrot.lane.b32.xlu0 %v2974_v45, %s5359_s1 }
0x1b21   :  { %v3228_v3 = vpop.xlane.xlu0 %3227 }
0x1b22   :  { %4584 = vrcp.f32 %v3228_v3  ;;  %v3545_v3 = vrot.slane %v3979_v40, %v4745_v28 }
0x1b25   :  { %v3231_v38 = vpop.xlane.xlu0 %3230 }
0x1b26   :  { %4586 = vrcp.f32 %v3231_v38 }
0x1b29   :  { %v3237_v6 = vpop.permute.xlu0 %3236 }
0x1b2a   :  { %4342 = vmatpush3.msra.mxu0 %v3237_v6 }
0x1b2b   :  { %4452 = vmatprep.subr.bf16.mxu0 %v4451_v44 }
0x1b2c   :  { %v4585_v7 = vpop.eup %4584 }
0x1b2d   :  { %v3234_v9 = vmul.f32 %v4585_v7, %v4581_v5  ;;  %v3399_v22 = vpop.permute.xlu0 %3398  ;;  %v3551_v7 = vrot.slane %v3979_v40, %v4750_v30  ;;  %v4641_v40 = vmov 0.0|0.0  }
0x1b2e   :  { %v3414_v25 = vsel %vm1581_vm4, %v3412_v23, %v3399_v22  ;;  %v3995_v22 = vld [vmem:[%s5343_s10 + $0x78] sm:$0xff] }
0x1b2f   :  { %4344 = vmatmul.mubr.msk.f32.vlgmr.msra.gmra.mrb[30].mxu0 %vm190_vm2, %v3234_v9  ;;  %v4479_v23 = vpack.c.bf16 %v3995_v22, %v3994_v46  ;;  %v4001_v22 = vld [vmem:[%s5347_s14] ss:$0 sm:$0xff] }
0x1b30   :  { %v4587_v10 = vpop.eup %4586  ;;  %4454 = vmatpush3.bf16.msra.mxu0 %v4451_v44 }
0x1b31   :  { %v3235_v11 = vmul.f32 %v4587_v10, %v4583_v1  ;;  %4456 = vmatprep.subr.bf16.mxu0 %v4455_v14 }
0x1b33   :  { %4349 = vmatmul.mubr.msk.f32.vlgmr.msra.gmra.mrb[40].mxu1 %vm190_vm2, %v3235_v11 }
0x1b34   :  { %4458 = vmatpush3.bf16.msra.mxu0 %v4455_v14  ;;  %v4467_v14 = vpack.c.bf16 %v3989_v8, %v3988_v13 }
0x1b36   :  { %4468 = vmatprep.subr.bf16.mxu0 %v4467_v14 }
0x1c02   :  { %v3308_v15 = vpop.f32.mrb[30].mxu0 }
0x1c03   :  { %3406 = vrot.lane.b32.xlu0 %v3308_v15, %s5360_s2  ;;  %v4345_v16 = vpop.f32.mrb[31].mxu0  ;;  %v3990_v15 = vld [vmem:[%s5343_s10 + $0x50] sm:$0xff] }
0x1c04   :  { %v3991_v16 = vld [vmem:[%s5343_s10 + $0x58] sm:$0xff] }
0x1c06   :  { %v3384_v18 = vpop.f32.mrb[40].mxu1 }
0x1c07   :  { %3408 = vrot.lane.b32.xlu1 %v3384_v18, %s5360_s2  ;;  %v4350_v20 = vpop.f32.mrb[41].mxu1  ;;  %v3992_v18 = vld [vmem:[%s5343_s10 + $0x60] sm:$0xff] }
0x1c08   :  { %v3993_v20 = vld [vmem:[%s5343_s10 + $0x68] sm:$0xff] }
0x1c09   :  { %v4475_v21 = vpack.c.bf16 %v3993_v20, %v3992_v18 }
0x1c75   :  { %v3407_v26 = vpop.permute.xlu0 %3406 }
0x1c76   :  { %v3416_v27 = vsel %vm1584_vm3, %v3414_v25, %v3407_v26 }
0x1c77   :  { %4359 = vmatprep.mubr.msk.f32.mxu0 %vm54_vm0, %v3416_v27 }
0x1c79   :  { %v3409_v32 = vpop.permute.xlu1 %3408 }
0x1c7a   :  { %v3417_v34 = vsel %vm1584_vm3, %v3415_v31, %v3409_v32 }
0x1c7b   :  { %4360 = vmatmul.mubr.msk.f32.vlgmr.msra.gmra.mrb[32].mxu0 %vm54_vm0, %v3417_v34 }
0x1c7c   :  { %4470 = vmatpush3.bf16.msra.mxu0 %v4467_v14 }
0x1d4e   :  { %v4361_v35 = vpop.f32.mrb[32].mxu0 }
0x1d4f   :  { %v3509_v37 = vadd.f32 %v4361_v35, %v3976_v17  ;;  %v3503_v43 = vpop.f32.mrb[33].mxu0 }
0x1d50   :  { %v3504_v45 = vadd.f32 %v3976_v17, %v3503_v43 }
0x1d51   :  { %v3515_v48 = vadd.f32 %v3509_v37, %v5045_v42 }
0x1d52   :  { %v3514_v50 = vadd.f32 %v3504_v45, %v5043_v39  ;;  %v3980_v39 = vld [vmem:[%s5341_s8 + $0x20] sm:$0xff] }
0x1d53   :  { %v3519_v19 = vsel %vm54_vm0, %v3515_v48, 0.0  ;;  %v4459_v57 = vpack.c.bf16 %v3981_v60, %v3980_v39 }
0x1d54   :  { %3520 = vadd.xlane.f32.xlu1 %v3519_v19  ;;  %v3516_v51 = vsel %vm54_vm0, %v3514_v50, 0.0  ;;  %v3997_v19 = vld [vmem:[%s5344_s11 + $0x1] ss:$0 sm:$0xff] }
0x1d55   :  { %3517 = vadd.xlane.f32.xlu0 %v3516_v51  ;;  %4460 = vmatprep.subr.bf16.mxu1 %v4459_v57 }
0x1d56   :  { %4462 = vmatpush3.bf16.msra.mxu1 %v4459_v57 }
0x1d57   :  { %4464 = vmatprep.subr.bf16.mxu1 %v4463_v0 }
0x1d5a   :  { %4466 = vmatpush3.bf16.msra.mxu1 %v4463_v0 }
0x1d5b   :  { %4483 = vmatprep.subr.bf16.mxu1 %v4641_v40 }
0x1de1   :  { %v3521_v33 = vpop.xlane.xlu1 %3520 }
0x1de2   :  { %v3523_v52 = vmul.f32 0.03125, %v3521_v33  ;;  %v3518_v53 = vpop.xlane.xlu0 %3517 }
0x1de3   :  { %v3522_v54 = vmul.f32 0.03125, %v3518_v53 }
0x1de4   :  { %v3525_v55 = vsub.f32 %v3515_v48, %v3523_v52 }
0x1de5   :  { %v3524_v56 = vsub.f32 %v3514_v50, %v3522_v54 }
0x1de6   :  { %v3527_v59 = vmul.f32 %v3525_v55, %v3525_v55 }
0x1de7   :  { %v3526_v58 = vmul.f32 %v3524_v56, %v3524_v56 }
0x1de8   :  { %v3531_v42 = vsel %vm54_vm0, %v3527_v59, 0.0 }
0x1de9   :  { %v3528_v36 = vsel %vm54_vm0, %v3526_v58, 0.0 }
0x1dea   :  { %3529 = vadd.xlane.f32.xlu0 %v3528_v36 }
0x1dee   :  { %3532 = vadd.xlane.f32.xlu0 %v3531_v42 }
0x1e77   :  { %v3530_v61 = vpop.xlane.xlu0 %3529 }
0x1e78   :  { %v3534_v2 = vmul.f32 0.03125, %v3530_v61 }
0x1e7a   :  { %v3536_v4 = vadd.f32 1e-12, %v3534_v2  ;;  %v3803_v2 = vld [vmem:[%s5346_s13] sm:$0xff] }
0x1e7b   :  { %v3533_v5 = vpop.xlane.xlu0 %3532 }
0x1e7c   :  { %4588 = vrsqrt.f32 %v3536_v4  ;;  %v3535_v47 = vmul.f32 0.03125, %v3533_v5  ;;  %v3804_v4 = vld [vmem:[%s5346_s13 + $0x8] sm:$0xff] }
0x1e7d   :  { %v4484_v5 = vpack.c.bf16 %v3804_v4, %v3803_v2 }
0x1e7e   :  { %v3537_v1 = vadd.f32 1e-12, %v3535_v47  ;;  %v3805_v47 = vld [vmem:[%s5346_s13 + $0x10] sm:$0xff] }
0x1e80   :  { %4590 = vrsqrt.f32 %v3537_v1  ;;  %v3806_v1 = vld [vmem:[%s5346_s13 + $0x18] sm:$0xff] }
0x1e86   :  { %v4589_v38 = vpop.eup %4588 }
0x1e87   :  { %v3540_v6 = vmul.f32 %v4589_v38, %v3524_v56 }
0x1e89   :  { %v3546_v9 = vmul.f32 %v3545_v3, %v3540_v6 }
0x1e8a   :  { %v4591_v10 = vpop.eup %4590 }
0x1e8b   :  { %v3541_v11 = vmul.f32 %v4591_v10, %v3525_v55  ;;  %v3552_v49 = vadd.f32 %v3551_v7, %v3546_v9 }
0x1e8d   :  { %v3547_v12 = vmul.f32 %v3545_v3, %v3541_v11  ;;  %4370 = vmatprep.mubr.msk.f32.mxu1 %vm54_vm0, %v3552_v49  ;;  %v4487_v3 = vpack.c.bf16 %v3806_v1, %v3805_v47 }
0x1e8f   :  { %v3553_v44 = vadd.f32 %v3551_v7, %v3547_v12 }
0x1e91   :  { %4371 = vmatmul.mubr.msk.f32.vlgmr.msra.gmra.mrb[42].mxu1 %vm54_vm0, %v3553_v44 }
0x1e92   :  { %4400 = vmatprep.mubr.msk.f32.mxu1 %vm4625_vm1, %v4624_v41  ;;  %v4471_v41 = vpack.c.bf16 %v3991_v16, %v3990_v15  ;;  %4485 = vmatpush3.bf16.msra.mxu1 %v4484_v5 }
0x1e93   :  { %4486 = vmatprep.subr.bf16.mxu1 %v4641_v40 }
0x1e94   :  { %4472 = vmatprep.subr.bf16.mxu0 %v4471_v41 }
0x1e95   :  { %4474 = vmatpush3.bf16.msra.mxu0 %v4471_v41 }
0x1e96   :  { %4476 = vmatprep.subr.bf16.mxu0 %v4475_v21  ;;  %4488 = vmatpush3.bf16.msra.mxu1 %v4487_v3 }
0x1e99   :  { %4478 = vmatpush3.bf16.msra.mxu0 %v4475_v21 }
0x1e9a   :  { %4480 = vmatprep.subr.bf16.mxu0 %v4479_v23 }
0x1e9d   :  { %4482 = vmatpush3.bf16.msra.mxu0 %v4479_v23 }
0x1f64   :  { %v4372_v25 = vpop.f32.mrb[42].mxu1 }
0x1f65   :  { %v3645_v26 = vadd.f32 %v4372_v25, %v3985_v24  ;;  %v3639_v27 = vpop.f32.mrb[43].mxu1 }
0x1f66   :  { %v3640_v29 = vadd.f32 %v3985_v24, %v3639_v27 }
0x1f67   :  { %v3651_v31 = vmul.f32 0.70710677, %v3645_v26  ;;  %v3649_v45 = vmul.f32 0.5, %v3645_v26 }
0x1f68   :  { %v3650_v32 = vmul.f32 0.70710677, %v3640_v29  ;;  %v3648_v37 = vmul.f32 0.5, %v3640_v29 }
0x1f69   :  { %4592 = verf.f32 %v3651_v31 }
0x1f6a   :  { %4594 = verf.f32 %v3650_v32 }
0x1f73   :  { %v4593_v34 = vpop.eup %4592 }
0x1f74   :  { %v4595_v17 = vpop.eup %4594  ;;  %v3655_v35 = vadd.f32 1.0, %v4593_v34 }
0x1f75   :  { %v3654_v43 = vadd.f32 1.0, %v4595_v17 }
0x1f76   :  { %v3657_v50 = vmul.f32 %v3655_v35, %v3649_v45 }
0x1f77   :  { %v3656_v48 = vmul.f32 %v3654_v43, %v3648_v37 }
0x1f79   :  { %4389 = vmatprep.mubr.msk.f32.mxu0 %vm1837_vm5, %v3656_v48 }
0x1f7a   :  { %4390 = vmatmul.mubr.msk.f32.vlgmr.msra.gmra.mrb[34].mxu0 %vm1837_vm5, %v3657_v50 }
0x204d   :  { %v4391_v51 = vpop.f32.mrb[34].mxu0 }
0x204e   :  { %v3753_v33 = vadd.f32 %v4391_v51, %v3997_v19  ;;  %v3747_v52 = vpop.f32.mrb[35].mxu0 }
0x204f   :  { %v3748_v53 = vadd.f32 %v3997_v19, %v3747_v52 }
0x2050   :  { %v3759_v54 = vadd.f32 %v3753_v33, %v3553_v44 }
0x2051   :  { %v3758_v55 = vadd.f32 %v3748_v53, %v3552_v49  ;;  %v4000_v49 = vld [vmem:[%s5345_s12 + $0x2] sm:$0x3]  ;;  %s4642_s12 = smov [#allocation2]  }
0x2052   :  { %v3763_v56 = vsel %vm54_vm0, %v3759_v54, 0.0  ;;  %v3789_v12 = vrot.slane %v4000_v49, %v4745_v28  ;;  %v3795_v14 = vrot.slane %v4000_v49, %v4750_v30  ;;  %s3894_s21 = sshll.u32 %s4642_s12, 4  ;;  %s3895_s21 = int_to_ptr.vmem [resolvable:$true] %s3894_s21 }
0x2053   :  { %3764 = vadd.xlane.f32.xlu0 %v3763_v56  ;;  %v3760_v58 = vsel %vm54_vm0, %v3758_v55, 0.0  ;;  %s4600_s0 = scalar_lea.vmem %s3895_s21, 32  ;;  %p4605_p1 = scmp.lt.s32.totalorder %s3895_s21, %s3895_s21 }
0x2054   :  { %3761 = vadd.xlane.f32.xlu1 %v3760_v58  ;;  %p4601_p0 = scmp.ne.s32.totalorder %s3895_s21, %s4600_s0  ;;  %p4606_p2 = scmp.lt.s32.totalorder %s4600_s0, %s4600_s0 }
0x2056   :  { %p4607_p3 = por %p4606_p2, %p4605_p1 }
0x2058   :  { %p4608_p4 = pnand %p4607_p3, %p4601_p0 }
0x20e0   :  { %v3765_v36 = vpop.xlane.xlu0 %3764 }
0x20e1   :  { %v3767_v59 = vmul.f32 0.03125, %v3765_v36  ;;  %v3762_v42 = vpop.xlane.xlu1 %3761 }
0x20e2   :  { %v3766_v39 = vmul.f32 0.03125, %v3762_v42 }
0x20e3   :  { %v3769_v60 = vsub.f32 %v3759_v54, %v3767_v59 }
0x20e4   :  { %v3768_v57 = vsub.f32 %v3758_v55, %v3766_v39 }
0x20e5   :  { %v3771_v62 = vmul.f32 %v3769_v60, %v3769_v60 }
0x20e6   :  { %v3770_v63 = vmul.f32 %v3768_v57, %v3768_v57 }
0x20e7   :  { %v3775_v0 = vsel %vm54_vm0, %v3771_v62, 0.0 }
0x20e8   :  { %3776 = vadd.xlane.f32.xlu0 %v3775_v0  ;;  %v3772_v61 = vsel %vm54_vm0, %v3770_v63, 0.0 }
0x20e9   :  { %3773 = vadd.xlane.f32.xlu1 %v3772_v61 }
0x2175   :  { %v3777_v38 = vpop.xlane.xlu0 %3776 }
0x2176   :  { %v3779_v6 = vmul.f32 0.03125, %v3777_v38  ;;  %v3774_v7 = vpop.xlane.xlu1 %3773 }
0x2177   :  { %v3778_v9 = vmul.f32 0.03125, %v3774_v7 }
0x2178   :  { %v3781_v10 = vadd.f32 1e-12, %v3779_v6 }
0x2179   :  { %v3780_v11 = vadd.f32 1e-12, %v3778_v9 }
0x217a   :  { %4596 = vrsqrt.f32 %v3781_v10 }
0x217b   :  { %4598 = vrsqrt.f32 %v3780_v11 }
0x2184   :  { %v4597_v44 = vpop.eup %4596 }
0x2185   :  { %v4599_v13 = vpop.eup %4598  ;;  %v3785_v8 = vmul.f32 %v4597_v44, %v3769_v60 }
0x2186   :  { %v3784_v15 = vmul.f32 %v4599_v13, %v3768_v57 }
0x2187   :  { %v3791_v16 = vmul.f32 %v3789_v12, %v3785_v8 }
0x2188   :  { %v3790_v41 = vmul.f32 %v3789_v12, %v3784_v15 }
0x2189   :  { %v3797_v18 = vadd.f32 %v3795_v14, %v3791_v16 }
0x218a   :  { %v3796_v20 = vadd.f32 %v3795_v14, %v3790_v41 }
0x218b   :  { %v3799_v21 = vrot.slane %v3797_v18, 7 }
0x218d   :  { %v3802_v46 = vsel %vm3801_vm6, %v3796_v20, %v3799_v21 }
0x218e   :  { %4401 = vmatmul.mubr.msk.f32.vlgmr.msra.gmra.mrb[44].mxu1 %vm54_vm0, %v3802_v46 }
0x2261   :  { %v3883_v28 = vpop.f32.mrb[44].mxu1 }
0x2262   :  { %v3884_v23 = vadd.f32 %v4001_v22, %v3883_v28  ;;  %v4402_v24 = vpop.f32.mrb[45].mxu1 }
0x2264   :  { %3887 = vst [vmem:[#allocation2] sm:$0x3] %v3884_v23 }
0x2265   :  { %4611 = shalt.err (!%p4608_p4)
}
0x2266   :  { %s4612_s24 = scalar_lea.hbm %s5348_s15, 32 }
0x2267   :  { %p4613_p5 = scmp.ne.s32.totalorder %s5348_s15, %s4612_s24  ;;  %p4616_p6 = scmp.lt.u32.totalorder %s4612_s24, %s5348_s15 }
0x2269   :  { %p4618_p7 = pnand %p4616_p6, %p4613_p5 }
0x226b   :  { %4621 = shalt.err (!%p4618_p7)
}
0x226c   :  { %3897 = dma.vmem_to_hbm [thread:$0]  %s3895_s21, 32, %s5348_s15, [#allocation3]  }
0x226d   :  { %4622 = dma.done.wait [#allocation3], 32  }
0x226e   :  { %4623 = vsyncadd [#allocation3], 4294967264 }
0x226f   :  { %3901 = vsyncpa [#allocation3], 1 }

</bundles_post_ra>
